<compile_context>
chip_gen: v7x
topology: tpu7x:2x2x1
jax: 0.10.0
libtpu: 0.0.40
codegen_flags: <defaults>
</compile_context>

<pallas_src>
import functools
import math

import jax
import jax.numpy as jnp
from jax.experimental import pallas as pl
from jax.experimental.pallas import tpu as pltpu

BN_EPS = 1e-5


# ----------------------------------------------------------------------------
# Fused kernel: 4 merged conv stages + avg-pool + survival MLP
# ----------------------------------------------------------------------------
def match_fused_kernel(
    long_ref, mask_ref, base_ref,
    w1_ref, w2_ref, w3_ref, w4_ref, cp_ref,
    wh1_ref, wh2_ref, wh3_ref, hp_ref, bh3_ref,
    o_ref,
):
    bb, L, _ = long_ref.shape

    def conv_stage(a, w_ref, stage, cout, padded):
        # a: (bb, l, C) bf16 channels-last. One matmul per stage: the long and
        # mask convs share a block-diagonal weight, so the matmul output is
        # already the concatenated [x | mask] activation of the next stage.
        if padded:
            # Conv1d(padding=1, padding_mode='replicate'): build the three taps
            # directly (no materialized (l+2) padded copy).
            lout = a.shape[1]
            left = jnp.concatenate([a[:, :1, :], a[:, :-1, :]], axis=1)    # tap l-1
            right = jnp.concatenate([a[:, 1:, :], a[:, -1:, :]], axis=1)   # tap l+1
            cols = jnp.concatenate([left, a, right], axis=-1)
        else:
            lout = a.shape[1] - 2
            cols = jnp.concatenate(
                [a[:, 0:lout, :], a[:, 1:1 + lout, :], a[:, 2:2 + lout, :]],
                axis=-1)
        k = cols.shape[-1]
        y = jnp.dot(cols.reshape(bb * lout, k), w_ref[...],
                    preferred_element_type=jnp.float32)          # bf16 MXU, f32 acc
        p = cp_ref[stage]                                        # (3, 40) f32
        y = jnp.maximum(y + p[0:1, :cout], 0.0)                  # conv bias + ReLU
        # TODO(synk): Dropout(p=0.4) is stochastic in train mode; identity here (eval).
        y = y * p[1:2, :cout] + p[2:3, :cout]                    # folded eval BatchNorm1d
        return y.reshape(bb, lout, cout)

    # Carried activation = torch.cat([x, mask], dim=channels), channels-last, bf16.
    a0 = jnp.concatenate([long_ref[...], mask_ref[...]], axis=-1)
    a1 = conv_stage(a0, w1_ref, 0, 40, True).astype(jnp.bfloat16)
    a2 = conv_stage(a1, w2_ref, 1, 40, True).astype(jnp.bfloat16)
    a3 = conv_stage(a2, w3_ref, 2, 40, True).astype(jnp.bfloat16)
    x4 = conv_stage(a3, w4_ref, 3, 32, False)                    # (bb, L-2, 32) f32

    # adaptive_avg_pool1d(., 1).squeeze()
    pooled = jnp.sum(x4, axis=1) * (1.0 / x4.shape[1])           # (bb, 32) f32

    # Survival head: cat([pooled, base], dim=1) feeds the original W1 directly.
    h = jnp.concatenate([pooled, base_ref[...]], axis=-1).astype(jnp.bfloat16)
    h = jnp.dot(h, wh1_ref[...], preferred_element_type=jnp.float32)
    p = hp_ref[0]
    h = jnp.maximum(h + p[0:1], 0.0)
    # TODO(synk): Dropout(p=0.2) treated as identity (eval-mode semantics).
    h = h * p[1:2] + p[2:3]
    h = jnp.dot(h.astype(jnp.bfloat16), wh2_ref[...], preferred_element_type=jnp.float32)
    p = hp_ref[1]
    h = jnp.maximum(h + p[0:1], 0.0)
    h = h * p[1:2] + p[2:3]
    o_ref[...] = (jnp.dot(h.astype(jnp.bfloat16), wh3_ref[...],
                          preferred_element_type=jnp.float32) + bh3_ref[...])


# ----------------------------------------------------------------------------
# Host-side parameter folding / merging
# ----------------------------------------------------------------------------
def _fold_bn(bias, gamma, beta, mean, var):
    scale = gamma * jax.lax.rsqrt(var + BN_EPS)
    shift = beta - mean * scale
    return jnp.concatenate([bias, scale, shift], axis=0)         # (3, Cout)


def _combine_conv(long_cb, mask_cb, cin_total):
    """Block-diagonal merge of a long-branch and a mask-branch conv so that one
    (3*cin_total, 40) matmul yields torch.cat([long(x_full), mask(m)], channels)."""
    wl, bl, gl, betl, ml, vl = long_cb                           # wl: (3, cin_l, cout_l)
    wm, bm, gm, betm, mm, vm = mask_cb                           # wm: (3, cin_m, cout_m)
    _, cin_l, cout_l = wl.shape
    _, cin_m, cout_m = wm.shape
    w = jnp.zeros((3, cin_total, cout_l + cout_m), jnp.float32)
    w = w.at[:, :cin_l, :cout_l].set(wl)                         # long conv: leading channels
    w = w.at[:, cin_total - cin_m:, cout_l:].set(wm)             # mask conv: trailing channels
    p = jnp.concatenate([_fold_bn(bl, gl, betl, ml, vl),
                         _fold_bn(bm, gm, betm, mm, vm)], axis=1)
    return w.reshape(3 * cin_total, cout_l + cout_m), p


def _full_spec(a):
    nd = a.ndim
    return pl.BlockSpec(a.shape, lambda i, nd=nd: (0,) * nd)


def _round_up(v, m):
    return (v + m - 1) // m * m


# ----------------------------------------------------------------------------
# MATCH.forward (single fused pallas_call)
# ----------------------------------------------------------------------------
def match_forward(params, long_ncl, base, mask_ncl, *, block_b=None):
    # PyTorch inputs are (B, C, L); the kernel is channels-last (B, L, C), bf16.
    x = jnp.transpose(long_ncl, (0, 2, 1)).astype(jnp.bfloat16)
    m = jnp.transpose(mask_ncl, (0, 2, 1)).astype(jnp.bfloat16)
    base = base.astype(jnp.float32)

    B, L, n_long = x.shape
    n_base = base.shape[-1]

    # ---- fold BN + merge branch weights (bf16 MXU operands, f32 params) ----
    w1c, p1c = _combine_conv(params["long1"], params["mask1"], 2 * n_long)
    w2c, p2c = _combine_conv(params["long2"], params["mask2"], 40)
    w3c, p3c = _combine_conv(params["long3"], params["mask3"], 40)
    wl4, bl4, gl4, betl4, ml4, vl4 = params["long4"]
    w4c = wl4.reshape(-1, wl4.shape[-1])                         # (120, 32)
    p4c = _fold_bn(bl4, gl4, betl4, ml4, vl4)

    cp = jnp.zeros((4, 3, 40), jnp.float32)
    cp = cp.at[0].set(p1c).at[1].set(p2c).at[2].set(p3c).at[3, :, :32].set(p4c)

    w1, b1, bn1, w2, b2, bn2, w3, b3 = params["survival"]
    hp = jnp.stack([_fold_bn(b1, *bn1), _fold_bn(b2, *bn2)], axis=0)   # (2, 3, 64)
    out_len = w3.shape[-1]

    weights = (w1c.astype(jnp.bfloat16), w2c.astype(jnp.bfloat16),
               w3c.astype(jnp.bfloat16), w4c.astype(jnp.bfloat16), cp,
               w1.astype(jnp.bfloat16), w2.astype(jnp.bfloat16),
               w3.astype(jnp.bfloat16), hp, b3)

    # ---- batch blocking: big blocks, but always >= 2 grid steps (v7x 2 TCs),
    #      and peak live slabs kept well under v7x's 64 MiB physical VMEM. ----
    if block_b is None:
        block_b = max(64, min(1024, 8192 // max(L, 1)))          # ~8 MiB live slabs / step
    Bb = min(_round_up(block_b, 8), max(8, _round_up(-(-B // 2), 8)))
    Bp = _round_up(B, Bb)
    if Bp // Bb < 2:
        Bp = 2 * Bb
    if Bp != B:
        pad = Bp - B
        x = jnp.pad(x, ((0, pad), (0, 0), (0, 0)))
        m = jnp.pad(m, ((0, pad), (0, 0), (0, 0)))
        base = jnp.pad(base, ((0, pad), (0, 0)))

    out = pl.pallas_call(
        match_fused_kernel,
        out_shape=jax.ShapeDtypeStruct((Bp, out_len), jnp.float32),
        grid=(Bp // Bb,),
        in_specs=[
            pl.BlockSpec((Bb, L, n_long), lambda i: (i, 0, 0)),
            pl.BlockSpec((Bb, L, n_long), lambda i: (i, 0, 0)),
            pl.BlockSpec((Bb, n_base), lambda i: (i, 0)),
        ] + [_full_spec(w) for w in weights],
        out_specs=pl.BlockSpec((Bb, out_len), lambda i: (i, 0)),
        compiler_params=pltpu.CompilerParams(
            dimension_semantics=("parallel",),
            vmem_limit_bytes=48 * 1024 * 1024),
    )(x, m, base, *weights)

    return out[:B]


# ----------------------------------------------------------------------------
# Parameter initialization (deterministic, shapes match the PyTorch module).
# ----------------------------------------------------------------------------
def _init_bn(key, c):
    k1, k2 = jax.random.split(key)
    gamma = 1.0 + 0.1 * jax.random.normal(k1, (1, c), jnp.float32)
    beta = 0.1 * jax.random.normal(k2, (1, c), jnp.float32)
    mean = jnp.zeros((1, c), jnp.float32)
    var = jnp.ones((1, c), jnp.float32)
    return gamma, beta, mean, var


def _init_conv(key, cin, cout):
    k1, k2, k3 = jax.random.split(key, 3)
    bound = 1.0 / math.sqrt(cin * 3)
    # stored as (3 taps, Cin, Cout)  ==  torch (Cout, Cin, 3) transposed
    w = jax.random.uniform(k1, (3, cin, cout), jnp.float32, -bound, bound)
    b = jax.random.uniform(k2, (1, cout), jnp.float32, -bound, bound)
    return (w, b, *(_init_bn(k3, cout)))


def _init_linear(key, fin, fout):
    k1, k2 = jax.random.split(key)
    bound = 1.0 / math.sqrt(fin)
    w = jax.random.uniform(k1, (fin, fout), jnp.float32, -bound, bound)
    b = jax.random.uniform(k2, (1, fout), jnp.float32, -bound, bound)
    return w, b


def init_match_params(key, n_long, n_base, out_len):
    ks = jax.random.split(key, 12)
    p = {
        "long1": _init_conv(ks[0], n_long, 32),
        "mask1": _init_conv(ks[1], n_long, 8),
        "long2": _init_conv(ks[2], 40, 32),
        "mask2": _init_conv(ks[3], 8, 8),
        "long3": _init_conv(ks[4], 40, 32),
        "mask3": _init_conv(ks[5], 8, 8),
        "long4": _init_conv(ks[6], 40, 32),
    }
    w1, b1 = _init_linear(ks[7], 32 + n_base, 64)
    bn1 = _init_bn(ks[8], 64)
    w2, b2 = _init_linear(ks[9], 64, 64)
    bn2 = _init_bn(ks[10], 64)
    w3, b3 = _init_linear(ks[11], 64, out_len)
    p["survival"] = (w1, b1, bn1, w2, b2, bn2, w3, b3)
    return p


# ----------------------------------------------------------------------------
# Plain-JAX f32 reference (unfused, unfolded) for a correctness cross-check.
# ----------------------------------------------------------------------------
def _ref_conv_block(x, cb, pad):
    w, b, gamma, beta, mean, var = cb
    if pad:
        x = jnp.pad(x, ((0, 0), (1, 1), (0, 0)), mode="edge")
    lout = x.shape[1] - 2
    y = sum(jnp.einsum("blc,co->blo", x[:, t:t + lout, :], w[t],
                       precision=jax.lax.Precision.HIGHEST) for t in range(3))
    y = jnp.maximum(y + b, 0.0)
    return (y - mean) * gamma * jax.lax.rsqrt(var + BN_EPS) + beta


def match_reference(params, long_ncl, base, mask_ncl):
    x = jnp.transpose(long_ncl, (0, 2, 1)).astype(jnp.float32)
    m = jnp.transpose(mask_ncl, (0, 2, 1)).astype(jnp.float32)
    base = base.astype(jnp.float32)
    x = _ref_conv_block(x, params["long1"], True)
    m = _ref_conv_block(m, params["mask1"], True)
    x = jnp.concatenate([x, m], axis=-1)
    x = _ref_conv_block(x, params["long2"], True)
    m = _ref_conv_block(m, params["mask2"], True)
    x = jnp.concatenate([x, m], axis=-1)
    x = _ref_conv_block(x, params["long3"], True)
    m = _ref_conv_block(m, params["mask3"], True)
    x = jnp.concatenate([x, m], axis=-1)
    x = _ref_conv_block(x, params["long4"], False)
    pooled = jnp.mean(x, axis=1)

    w1, b1, bn1, w2, b2, bn2, w3, b3 = params["survival"]
    h = jnp.dot(jnp.concatenate([pooled, base], axis=-1), w1,
                precision=jax.lax.Precision.HIGHEST) + b1
    h = jnp.maximum(h, 0.0)
    g1, bt1, m1, v1 = bn1
    h = (h - m1) * g1 * jax.lax.rsqrt(v1 + BN_EPS) + bt1
    h = jnp.dot(h, w2, precision=jax.lax.Precision.HIGHEST) + b2
    h = jnp.maximum(h, 0.0)
    g2, bt2, m2, v2 = bn2
    h = (h - m2) * g2 * jax.lax.rsqrt(v2 + BN_EPS) + bt2
    return jnp.dot(h, w3, precision=jax.lax.Precision.HIGHEST) + b3


if __name__ == "__main__":
    B, n_long, n_base, L, out_len = 2, 4, 5, 16, 3

    key = jax.random.PRNGKey(0)
    k_param, k_long, k_base, k_mask = jax.random.split(key, 4)

    params = init_match_params(k_param, n_long, n_base, out_len)
    long_in = jax.random.normal(k_long, (B, n_long, L), jnp.float32)
    base_in = jax.random.normal(k_base, (B, n_base), jnp.float32)
    mask_in = jax.random.normal(k_mask, (B, n_long, L), jnp.float32)

    fwd = jax.jit(functools.partial(match_forward, params))
    out = jax.block_until_ready(fwd(long_in, base_in, mask_in))

    ref = jax.block_until_ready(
        jax.jit(functools.partial(match_reference, params))(long_in, base_in, mask_in))

    assert out.shape == (B, out_len), out.shape
    assert bool(jnp.all(jnp.isfinite(out)))
    # bf16 MXU operands (f32 accumulate) vs f32 reference: tolerance widened vs
    # the old 3e-2 f32-operand baseline.
    max_err = float(jnp.max(jnp.abs(out - ref)))
    assert max_err < 6e-2, f"mismatch vs reference: {max_err}"
    print("KERNEL_OK")
</pallas_src>

<mosaic_0001>
module attributes {stable_mosaic.version = 11 : i64} {
  func.func @match_fused_kernel(%arg0: i32, %arg1: memref<8x16x4xbf16, #tpu.memory_space<vmem>>, %arg2: memref<8x16x4xbf16, #tpu.memory_space<vmem>>, %arg3: memref<8x5xf32, #tpu.memory_space<vmem>>, %arg4: memref<24x40xbf16, #tpu.memory_space<vmem>>, %arg5: memref<120x40xbf16, #tpu.memory_space<vmem>>, %arg6: memref<120x40xbf16, #tpu.memory_space<vmem>>, %arg7: memref<120x32xbf16, #tpu.memory_space<vmem>>, %arg8: memref<4x3x40xf32, #tpu.memory_space<vmem>>, %arg9: memref<37x64xbf16, #tpu.memory_space<vmem>>, %arg10: memref<64x64xbf16, #tpu.memory_space<vmem>>, %arg11: memref<64x3xbf16, #tpu.memory_space<vmem>>, %arg12: memref<2x3x64xf32, #tpu.memory_space<vmem>>, %arg13: memref<1x3xf32, #tpu.memory_space<vmem>>, %arg14: memref<8x3xf32, #tpu.memory_space<vmem>>) attributes {dimension_semantics = [#tpu.dimension_semantics<parallel>], iteration_bounds = array<i64: 2>, scalar_prefetch = 0 : i64, scratch_operands = 0 : i64, tpu.core_type = #tpu.core_type<tc>, window_params = [{transform_indices = @transform_0, window_bounds = array<i64: 8, 16, 4>}, {transform_indices = @transform_1, window_bounds = array<i64: 8, 16, 4>}, {transform_indices = @transform_2, window_bounds = array<i64: 8, 5>}, {pipeline_mode = #tpu.pipeline_mode<synchronous>, transform_indices = @transform_3, window_bounds = array<i64: 24, 40>}, {pipeline_mode = #tpu.pipeline_mode<synchronous>, transform_indices = @transform_4, window_bounds = array<i64: 120, 40>}, {pipeline_mode = #tpu.pipeline_mode<synchronous>, transform_indices = @transform_5, window_bounds = array<i64: 120, 40>}, {pipeline_mode = #tpu.pipeline_mode<synchronous>, transform_indices = @transform_6, window_bounds = array<i64: 120, 32>}, {pipeline_mode = #tpu.pipeline_mode<synchronous>, transform_indices = @transform_7, window_bounds = array<i64: 4, 3, 40>}, {pipeline_mode = #tpu.pipeline_mode<synchronous>, transform_indices = @transform_8, window_bounds = array<i64: 37, 64>}, {pipeline_mode = #tpu.pipeline_mode<synchronous>, transform_indices = @transform_9, window_bounds = array<i64: 64, 64>}, {pipeline_mode = #tpu.pipeline_mode<synchronous>, transform_indices = @transform_10, window_bounds = array<i64: 64, 3>}, {pipeline_mode = #tpu.pipeline_mode<synchronous>, transform_indices = @transform_11, window_bounds = array<i64: 2, 3, 64>}, {pipeline_mode = #tpu.pipeline_mode<synchronous>, transform_indices = @transform_12, window_bounds = array<i64: 1, 3>}, {transform_indices = @transform_13, window_bounds = array<i64: 8, 3>}]} {
    %c0 = arith.constant 0 : index
    %c0_0 = arith.constant 0 : index
    %c0_1 = arith.constant 0 : index
    %0 = vector.load %arg1[%c0, %c0_0, %c0_1] : memref<8x16x4xbf16, #tpu.memory_space<vmem>>, vector<8x16x4xbf16>
    %c0_2 = arith.constant 0 : index
    %c0_3 = arith.constant 0 : index
    %c0_4 = arith.constant 0 : index
    %1 = vector.load %arg2[%c0_2, %c0_3, %c0_4] : memref<8x16x4xbf16, #tpu.memory_space<vmem>>, vector<8x16x4xbf16>
    %2 = tpu.concatenate %0, %1 in 2 : vector<8x16x4xbf16>, vector<8x16x4xbf16> -> vector<8x16x8xbf16>
    %3 = vector.extract_strided_slice %2 {offsets = [0, 0, 0], sizes = [8, 1, 8], strides = [1, 1, 1]} : vector<8x16x8xbf16> to vector<8x1x8xbf16>
    %4 = vector.extract_strided_slice %2 {offsets = [0, 0, 0], sizes = [8, 15, 8], strides = [1, 1, 1]} : vector<8x16x8xbf16> to vector<8x15x8xbf16>
    %5 = tpu.concatenate %3, %4 in 1 : vector<8x1x8xbf16>, vector<8x15x8xbf16> -> vector<8x16x8xbf16>
    %6 = vector.extract_strided_slice %2 {offsets = [0, 1, 0], sizes = [8, 15, 8], strides = [1, 1, 1]} : vector<8x16x8xbf16> to vector<8x15x8xbf16>
    %7 = vector.extract_strided_slice %2 {offsets = [0, 15, 0], sizes = [8, 1, 8], strides = [1, 1, 1]} : vector<8x16x8xbf16> to vector<8x1x8xbf16>
    %8 = tpu.concatenate %6, %7 in 1 : vector<8x15x8xbf16>, vector<8x1x8xbf16> -> vector<8x16x8xbf16>
    %9 = tpu.concatenate %5, %2, %8 in 2 : vector<8x16x8xbf16>, vector<8x16x8xbf16>, vector<8x16x8xbf16> -> vector<8x16x24xbf16>
    %10 = vector.shape_cast %9 : vector<8x16x24xbf16> to vector<128x24xbf16>
    %c0_5 = arith.constant 0 : index
    %c0_6 = arith.constant 0 : index
    %11 = vector.load %arg4[%c0_5, %c0_6] : memref<24x40xbf16, #tpu.memory_space<vmem>>, vector<24x40xbf16>
    %cst = arith.constant dense<0.000000e+00> : vector<128x40xf32>
    %12 = tpu.matmul %10, %11, %cst {dimension_numbers = #tpu.dot_dimension_numbers<[1], [0], [0], [1], [0, 0, 1, 1], [], []>} : vector<128x24xbf16>, vector<24x40xbf16>, vector<128x40xf32> -> vector<128x40xf32>
    %c0_7 = arith.constant 0 : index
    %c0_8 = arith.constant 0 : index
    %c0_9 = arith.constant 0 : index
    %13 = vector.load %arg8[%c0_7, %c0_8, %c0_9] : memref<4x3x40xf32, #tpu.memory_space<vmem>>, vector<1x3x40xf32>
    %14 = vector.shape_cast %13 : vector<1x3x40xf32> to vector<3x40xf32>
    %15 = vector.extract_strided_slice %14 {offsets = [0, 0], sizes = [1, 40], strides = [1, 1]} : vector<3x40xf32> to vector<1x40xf32>
    %16 = vector.broadcast %15 : vector<1x40xf32> to vector<128x40xf32>
    %17 = arith.addf %12, %16 : vector<128x40xf32>
    %cst_10 = arith.constant 0.000000e+00 : f32
    %18 = vector.broadcast %cst_10 : f32 to vector<128x40xf32>
    %19 = arith.maximumf %17, %18 : vector<128x40xf32>
    %20 = vector.extract_strided_slice %14 {offsets = [1, 0], sizes = [1, 40], strides = [1, 1]} : vector<3x40xf32> to vector<1x40xf32>
    %21 = vector.broadcast %20 : vector<1x40xf32> to vector<128x40xf32>
    %22 = arith.mulf %19, %21 : vector<128x40xf32>
    %23 = vector.extract_strided_slice %14 {offsets = [2, 0], sizes = [1, 40], strides = [1, 1]} : vector<3x40xf32> to vector<1x40xf32>
    %24 = vector.broadcast %23 : vector<1x40xf32> to vector<128x40xf32>
    %25 = arith.addf %22, %24 : vector<128x40xf32>
    %26 = vector.shape_cast %25 : vector<128x40xf32> to vector<8x16x40xf32>
    %27 = arith.truncf %26 : vector<8x16x40xf32> to vector<8x16x40xbf16>
    %28 = vector.extract_strided_slice %27 {offsets = [0, 0, 0], sizes = [8, 1, 40], strides = [1, 1, 1]} : vector<8x16x40xbf16> to vector<8x1x40xbf16>
    %29 = vector.extract_strided_slice %27 {offsets = [0, 0, 0], sizes = [8, 15, 40], strides = [1, 1, 1]} : vector<8x16x40xbf16> to vector<8x15x40xbf16>
    %30 = tpu.concatenate %28, %29 in 1 : vector<8x1x40xbf16>, vector<8x15x40xbf16> -> vector<8x16x40xbf16>
    %31 = vector.extract_strided_slice %27 {offsets = [0, 1, 0], sizes = [8, 15, 40], strides = [1, 1, 1]} : vector<8x16x40xbf16> to vector<8x15x40xbf16>
    %32 = vector.extract_strided_slice %27 {offsets = [0, 15, 0], sizes = [8, 1, 40], strides = [1, 1, 1]} : vector<8x16x40xbf16> to vector<8x1x40xbf16>
    %33 = tpu.concatenate %31, %32 in 1 : vector<8x15x40xbf16>, vector<8x1x40xbf16> -> vector<8x16x40xbf16>
    %34 = tpu.concatenate %30, %27, %33 in 2 : vector<8x16x40xbf16>, vector<8x16x40xbf16>, vector<8x16x40xbf16> -> vector<8x16x120xbf16>
    %35 = vector.shape_cast %34 : vector<8x16x120xbf16> to vector<128x120xbf16>
    %c0_11 = arith.constant 0 : index
    %c0_12 = arith.constant 0 : index
    %36 = vector.load %arg5[%c0_11, %c0_12] : memref<120x40xbf16, #tpu.memory_space<vmem>>, vector<120x40xbf16>
    %cst_13 = arith.constant dense<0.000000e+00> : vector<128x40xf32>
    %37 = tpu.matmul %35, %36, %cst_13 {dimension_numbers = #tpu.dot_dimension_numbers<[1], [0], [0], [1], [0, 0, 1, 1], [], []>} : vector<128x120xbf16>, vector<120x40xbf16>, vector<128x40xf32> -> vector<128x40xf32>
    %c1 = arith.constant 1 : index
    %c0_14 = arith.constant 0 : index
    %c0_15 = arith.constant 0 : index
    %38 = vector.load %arg8[%c1, %c0_14, %c0_15] : memref<4x3x40xf32, #tpu.memory_space<vmem>>, vector<1x3x40xf32>
    %39 = vector.shape_cast %38 : vector<1x3x40xf32> to vector<3x40xf32>
    %40 = vector.extract_strided_slice %39 {offsets = [0, 0], sizes = [1, 40], strides = [1, 1]} : vector<3x40xf32> to vector<1x40xf32>
    %41 = vector.broadcast %40 : vector<1x40xf32> to vector<128x40xf32>
    %42 = arith.addf %37, %41 : vector<128x40xf32>
    %cst_16 = arith.constant 0.000000e+00 : f32
    %43 = vector.broadcast %cst_16 : f32 to vector<128x40xf32>
    %44 = arith.maximumf %42, %43 : vector<128x40xf32>
    %45 = vector.extract_strided_slice %39 {offsets = [1, 0], sizes = [1, 40], strides = [1, 1]} : vector<3x40xf32> to vector<1x40xf32>
    %46 = vector.broadcast %45 : vector<1x40xf32> to vector<128x40xf32>
    %47 = arith.mulf %44, %46 : vector<128x40xf32>
    %48 = vector.extract_strided_slice %39 {offsets = [2, 0], sizes = [1, 40], strides = [1, 1]} : vector<3x40xf32> to vector<1x40xf32>
    %49 = vector.broadcast %48 : vector<1x40xf32> to vector<128x40xf32>
    %50 = arith.addf %47, %49 : vector<128x40xf32>
    %51 = vector.shape_cast %50 : vector<128x40xf32> to vector<8x16x40xf32>
    %52 = arith.truncf %51 : vector<8x16x40xf32> to vector<8x16x40xbf16>
    %53 = vector.extract_strided_slice %52 {offsets = [0, 0, 0], sizes = [8, 1, 40], strides = [1, 1, 1]} : vector<8x16x40xbf16> to vector<8x1x40xbf16>
    %54 = vector.extract_strided_slice %52 {offsets = [0, 0, 0], sizes = [8, 15, 40], strides = [1, 1, 1]} : vector<8x16x40xbf16> to vector<8x15x40xbf16>
    %55 = tpu.concatenate %53, %54 in 1 : vector<8x1x40xbf16>, vector<8x15x40xbf16> -> vector<8x16x40xbf16>
    %56 = vector.extract_strided_slice %52 {offsets = [0, 1, 0], sizes = [8, 15, 40], strides = [1, 1, 1]} : vector<8x16x40xbf16> to vector<8x15x40xbf16>
    %57 = vector.extract_strided_slice %52 {offsets = [0, 15, 0], sizes = [8, 1, 40], strides = [1, 1, 1]} : vector<8x16x40xbf16> to vector<8x1x40xbf16>
    %58 = tpu.concatenate %56, %57 in 1 : vector<8x15x40xbf16>, vector<8x1x40xbf16> -> vector<8x16x40xbf16>
    %59 = tpu.concatenate %55, %52, %58 in 2 : vector<8x16x40xbf16>, vector<8x16x40xbf16>, vector<8x16x40xbf16> -> vector<8x16x120xbf16>
    %60 = vector.shape_cast %59 : vector<8x16x120xbf16> to vector<128x120xbf16>
    %c0_17 = arith.constant 0 : index
    %c0_18 = arith.constant 0 : index
    %61 = vector.load %arg6[%c0_17, %c0_18] : memref<120x40xbf16, #tpu.memory_space<vmem>>, vector<120x40xbf16>
    %cst_19 = arith.constant dense<0.000000e+00> : vector<128x40xf32>
    %62 = tpu.matmul %60, %61, %cst_19 {dimension_numbers = #tpu.dot_dimension_numbers<[1], [0], [0], [1], [0, 0, 1, 1], [], []>} : vector<128x120xbf16>, vector<120x40xbf16>, vector<128x40xf32> -> vector<128x40xf32>
    %c2 = arith.constant 2 : index
    %c0_20 = arith.constant 0 : index
    %c0_21 = arith.constant 0 : index
    %63 = vector.load %arg8[%c2, %c0_20, %c0_21] : memref<4x3x40xf32, #tpu.memory_space<vmem>>, vector<1x3x40xf32>
    %64 = vector.shape_cast %63 : vector<1x3x40xf32> to vector<3x40xf32>
    %65 = vector.extract_strided_slice %64 {offsets = [0, 0], sizes = [1, 40], strides = [1, 1]} : vector<3x40xf32> to vector<1x40xf32>
    %66 = vector.broadcast %65 : vector<1x40xf32> to vector<128x40xf32>
    %67 = arith.addf %62, %66 : vector<128x40xf32>
    %cst_22 = arith.constant 0.000000e+00 : f32
    %68 = vector.broadcast %cst_22 : f32 to vector<128x40xf32>
    %69 = arith.maximumf %67, %68 : vector<128x40xf32>
    %70 = vector.extract_strided_slice %64 {offsets = [1, 0], sizes = [1, 40], strides = [1, 1]} : vector<3x40xf32> to vector<1x40xf32>
    %71 = vector.broadcast %70 : vector<1x40xf32> to vector<128x40xf32>
    %72 = arith.mulf %69, %71 : vector<128x40xf32>
    %73 = vector.extract_strided_slice %64 {offsets = [2, 0], sizes = [1, 40], strides = [1, 1]} : vector<3x40xf32> to vector<1x40xf32>
    %74 = vector.broadcast %73 : vector<1x40xf32> to vector<128x40xf32>
    %75 = arith.addf %72, %74 : vector<128x40xf32>
    %76 = vector.shape_cast %75 : vector<128x40xf32> to vector<8x16x40xf32>
    %77 = arith.truncf %76 : vector<8x16x40xf32> to vector<8x16x40xbf16>
    %78 = vector.extract_strided_slice %77 {offsets = [0, 0, 0], sizes = [8, 14, 40], strides = [1, 1, 1]} : vector<8x16x40xbf16> to vector<8x14x40xbf16>
    %79 = vector.extract_strided_slice %77 {offsets = [0, 1, 0], sizes = [8, 14, 40], strides = [1, 1, 1]} : vector<8x16x40xbf16> to vector<8x14x40xbf16>
    %80 = vector.extract_strided_slice %77 {offsets = [0, 2, 0], sizes = [8, 14, 40], strides = [1, 1, 1]} : vector<8x16x40xbf16> to vector<8x14x40xbf16>
    %81 = tpu.concatenate %78, %79, %80 in 2 : vector<8x14x40xbf16>, vector<8x14x40xbf16>, vector<8x14x40xbf16> -> vector<8x14x120xbf16>
    %82 = vector.shape_cast %81 : vector<8x14x120xbf16> to vector<112x120xbf16>
    %c0_23 = arith.constant 0 : index
    %c0_24 = arith.constant 0 : index
    %83 = vector.load %arg7[%c0_23, %c0_24] : memref<120x32xbf16, #tpu.memory_space<vmem>>, vector<120x32xbf16>
    %cst_25 = arith.constant dense<0.000000e+00> : vector<112x32xf32>
    %84 = tpu.matmul %82, %83, %cst_25 {dimension_numbers = #tpu.dot_dimension_numbers<[1], [0], [0], [1], [0, 0, 1, 1], [], []>} : vector<112x120xbf16>, vector<120x32xbf16>, vector<112x32xf32> -> vector<112x32xf32>
    %c3 = arith.constant 3 : index
    %c0_26 = arith.constant 0 : index
    %c0_27 = arith.constant 0 : index
    %85 = vector.load %arg8[%c3, %c0_26, %c0_27] : memref<4x3x40xf32, #tpu.memory_space<vmem>>, vector<1x3x40xf32>
    %86 = vector.shape_cast %85 : vector<1x3x40xf32> to vector<3x40xf32>
    %87 = vector.extract_strided_slice %86 {offsets = [0, 0], sizes = [1, 32], strides = [1, 1]} : vector<3x40xf32> to vector<1x32xf32>
    %88 = vector.broadcast %87 : vector<1x32xf32> to vector<112x32xf32>
    %89 = arith.addf %84, %88 : vector<112x32xf32>
    %cst_28 = arith.constant 0.000000e+00 : f32
    %90 = vector.broadcast %cst_28 : f32 to vector<112x32xf32>
    %91 = arith.maximumf %89, %90 : vector<112x32xf32>
    %92 = vector.extract_strided_slice %86 {offsets = [1, 0], sizes = [1, 32], strides = [1, 1]} : vector<3x40xf32> to vector<1x32xf32>
    %93 = vector.broadcast %92 : vector<1x32xf32> to vector<112x32xf32>
    %94 = arith.mulf %91, %93 : vector<112x32xf32>
    %95 = vector.extract_strided_slice %86 {offsets = [2, 0], sizes = [1, 32], strides = [1, 1]} : vector<3x40xf32> to vector<1x32xf32>
    %96 = vector.broadcast %95 : vector<1x32xf32> to vector<112x32xf32>
    %97 = arith.addf %94, %96 : vector<112x32xf32>
    %98 = vector.shape_cast %97 : vector<112x32xf32> to vector<8x14x32xf32>
    %cst_29 = arith.constant dense<0.000000e+00> : vector<8x32xf32>
    %99 = vector.multi_reduction <add>, %98, %cst_29 [1] : vector<8x14x32xf32> to vector<8x32xf32>
    %cst_30 = arith.constant 0.0714285746 : f32
    %100 = vector.broadcast %cst_30 : f32 to vector<8x32xf32>
    %101 = arith.mulf %99, %100 : vector<8x32xf32>
    %c0_31 = arith.constant 0 : index
    %c0_32 = arith.constant 0 : index
    %102 = vector.load %arg3[%c0_31, %c0_32] : memref<8x5xf32, #tpu.memory_space<vmem>>, vector<8x5xf32>
    %103 = tpu.concatenate %101, %102 in 1 : vector<8x32xf32>, vector<8x5xf32> -> vector<8x37xf32>
    %104 = arith.truncf %103 : vector<8x37xf32> to vector<8x37xbf16>
    %c0_33 = arith.constant 0 : index
    %c0_34 = arith.constant 0 : index
    %105 = vector.load %arg9[%c0_33, %c0_34] : memref<37x64xbf16, #tpu.memory_space<vmem>>, vector<37x64xbf16>
    %cst_35 = arith.constant dense<0.000000e+00> : vector<8x64xf32>
    %106 = tpu.matmul %104, %105, %cst_35 {dimension_numbers = #tpu.dot_dimension_numbers<[1], [0], [0], [1], [0, 0, 1, 1], [], []>} : vector<8x37xbf16>, vector<37x64xbf16>, vector<8x64xf32> -> vector<8x64xf32>
    %c0_36 = arith.constant 0 : index
    %c0_37 = arith.constant 0 : index
    %c0_38 = arith.constant 0 : index
    %107 = vector.load %arg12[%c0_36, %c0_37, %c0_38] : memref<2x3x64xf32, #tpu.memory_space<vmem>>, vector<1x3x64xf32>
    %108 = vector.shape_cast %107 : vector<1x3x64xf32> to vector<3x64xf32>
    %109 = vector.extract_strided_slice %108 {offsets = [0, 0], sizes = [1, 64], strides = [1, 1]} : vector<3x64xf32> to vector<1x64xf32>
    %110 = vector.broadcast %109 : vector<1x64xf32> to vector<8x64xf32>
    %111 = arith.addf %106, %110 : vector<8x64xf32>
    %cst_39 = arith.constant 0.000000e+00 : f32
    %112 = vector.broadcast %cst_39 : f32 to vector<8x64xf32>
    %113 = arith.maximumf %111, %112 : vector<8x64xf32>
    %114 = vector.extract_strided_slice %108 {offsets = [1, 0], sizes = [1, 64], strides = [1, 1]} : vector<3x64xf32> to vector<1x64xf32>
    %115 = vector.broadcast %114 : vector<1x64xf32> to vector<8x64xf32>
    %116 = arith.mulf %113, %115 : vector<8x64xf32>
    %117 = vector.extract_strided_slice %108 {offsets = [2, 0], sizes = [1, 64], strides = [1, 1]} : vector<3x64xf32> to vector<1x64xf32>
    %118 = vector.broadcast %117 : vector<1x64xf32> to vector<8x64xf32>
    %119 = arith.addf %116, %118 : vector<8x64xf32>
    %120 = arith.truncf %119 : vector<8x64xf32> to vector<8x64xbf16>
    %c0_40 = arith.constant 0 : index
    %c0_41 = arith.constant 0 : index
    %121 = vector.load %arg10[%c0_40, %c0_41] : memref<64x64xbf16, #tpu.memory_space<vmem>>, vector<64x64xbf16>
    %cst_42 = arith.constant dense<0.000000e+00> : vector<8x64xf32>
    %122 = tpu.matmul %120, %121, %cst_42 {dimension_numbers = #tpu.dot_dimension_numbers<[1], [0], [0], [1], [0, 0, 1, 1], [], []>} : vector<8x64xbf16>, vector<64x64xbf16>, vector<8x64xf32> -> vector<8x64xf32>
    %c1_43 = arith.constant 1 : index
    %c0_44 = arith.constant 0 : index
    %c0_45 = arith.constant 0 : index
    %123 = vector.load %arg12[%c1_43, %c0_44, %c0_45] : memref<2x3x64xf32, #tpu.memory_space<vmem>>, vector<1x3x64xf32>
    %124 = vector.shape_cast %123 : vector<1x3x64xf32> to vector<3x64xf32>
    %125 = vector.extract_strided_slice %124 {offsets = [0, 0], sizes = [1, 64], strides = [1, 1]} : vector<3x64xf32> to vector<1x64xf32>
    %126 = vector.broadcast %125 : vector<1x64xf32> to vector<8x64xf32>
    %127 = arith.addf %122, %126 : vector<8x64xf32>
    %cst_46 = arith.constant 0.000000e+00 : f32
    %128 = vector.broadcast %cst_46 : f32 to vector<8x64xf32>
    %129 = arith.maximumf %127, %128 : vector<8x64xf32>
    %130 = vector.extract_strided_slice %124 {offsets = [1, 0], sizes = [1, 64], strides = [1, 1]} : vector<3x64xf32> to vector<1x64xf32>
    %131 = vector.broadcast %130 : vector<1x64xf32> to vector<8x64xf32>
    %132 = arith.mulf %129, %131 : vector<8x64xf32>
    %133 = vector.extract_strided_slice %124 {offsets = [2, 0], sizes = [1, 64], strides = [1, 1]} : vector<3x64xf32> to vector<1x64xf32>
    %134 = vector.broadcast %133 : vector<1x64xf32> to vector<8x64xf32>
    %135 = arith.addf %132, %134 : vector<8x64xf32>
    %136 = arith.truncf %135 : vector<8x64xf32> to vector<8x64xbf16>
    %c0_47 = arith.constant 0 : index
    %c0_48 = arith.constant 0 : index
    %137 = vector.load %arg11[%c0_47, %c0_48] : memref<64x3xbf16, #tpu.memory_space<vmem>>, vector<64x3xbf16>
    %cst_49 = arith.constant dense<0.000000e+00> : vector<8x3xf32>
    %138 = tpu.matmul %136, %137, %cst_49 {dimension_numbers = #tpu.dot_dimension_numbers<[1], [0], [0], [1], [0, 0, 1, 1], [], []>} : vector<8x64xbf16>, vector<64x3xbf16>, vector<8x3xf32> -> vector<8x3xf32>
    %c0_50 = arith.constant 0 : index
    %c0_51 = arith.constant 0 : index
    %139 = vector.load %arg13[%c0_50, %c0_51] : memref<1x3xf32, #tpu.memory_space<vmem>>, vector<1x3xf32>
    %140 = vector.broadcast %139 : vector<1x3xf32> to vector<8x3xf32>
    %141 = arith.addf %138, %140 : vector<8x3xf32>
    %c0_52 = arith.constant 0 : index
    %c0_53 = arith.constant 0 : index
    %142 = vector.load %arg14[%c0_52, %c0_53] : memref<8x3xf32, #tpu.memory_space<vmem>>, vector<8x3xf32>
    tpu.vector_store %arg14[%c0_52, %c0_53], %141 {strides = array<i32>} : memref<8x3xf32, #tpu.memory_space<vmem>>, vector<8x3xf32>,
    return
  }
  func.func @transform_0(%arg0: i32) -> (i32, i32, i32) {
    %c0_i32 = arith.constant 0 : i32
    %c0_i32_0 = arith.constant 0 : i32
    %c0_i32_1 = arith.constant 0 : i32
    return %arg0, %c0_i32, %c0_i32_0 : i32, i32, i32
  }
  func.func @transform_1(%arg0: i32) -> (i32, i32, i32) {
    %c0_i32 = arith.constant 0 : i32
    %c0_i32_0 = arith.constant 0 : i32
    %c0_i32_1 = arith.constant 0 : i32
    return %arg0, %c0_i32, %c0_i32_0 : i32, i32, i32
  }
  func.func @transform_2(%arg0: i32) -> (i32, i32) {
    %c0_i32 = arith.constant 0 : i32
    %c0_i32_0 = arith.constant 0 : i32
    return %arg0, %c0_i32 : i32, i32
  }
  func.func @transform_3(%arg0: i32) -> (i32, i32) {
    %c0_i32 = arith.constant 0 : i32
    %c0_i32_0 = arith.constant 0 : i32
    %c0_i32_1 = arith.constant 0 : i32
    return %c0_i32, %c0_i32_0 : i32, i32
  }
  func.func @transform_4(%arg0: i32) -> (i32, i32) {
    %c0_i32 = arith.constant 0 : i32
    %c0_i32_0 = arith.constant 0 : i32
    %c0_i32_1 = arith.constant 0 : i32
    return %c0_i32, %c0_i32_0 : i32, i32
  }
  func.func @transform_5(%arg0: i32) -> (i32, i32) {
    %c0_i32 = arith.constant 0 : i32
    %c0_i32_0 = arith.constant 0 : i32
    %c0_i32_1 = arith.constant 0 : i32
    return %c0_i32, %c0_i32_0 : i32, i32
  }
  func.func @transform_6(%arg0: i32) -> (i32, i32) {
    %c0_i32 = arith.constant 0 : i32
    %c0_i32_0 = arith.constant 0 : i32
    %c0_i32_1 = arith.constant 0 : i32
    return %c0_i32, %c0_i32_0 : i32, i32
  }
  func.func @transform_7(%arg0: i32) -> (i32, i32, i32) {
    %c0_i32 = arith.constant 0 : i32
    %c0_i32_0 = arith.constant 0 : i32
    %c0_i32_1 = arith.constant 0 : i32
    %c0_i32_2 = arith.constant 0 : i32
    return %c0_i32, %c0_i32_0, %c0_i32_1 : i32, i32, i32
  }
  func.func @transform_8(%arg0: i32) -> (i32, i32) {
    %c0_i32 = arith.constant 0 : i32
    %c0_i32_0 = arith.constant 0 : i32
    %c0_i32_1 = arith.constant 0 : i32
    return %c0_i32, %c0_i32_0 : i32, i32
  }
  func.func @transform_9(%arg0: i32) -> (i32, i32) {
    %c0_i32 = arith.constant 0 : i32
    %c0_i32_0 = arith.constant 0 : i32
    %c0_i32_1 = arith.constant 0 : i32
    return %c0_i32, %c0_i32_0 : i32, i32
  }
  func.func @transform_10(%arg0: i32) -> (i32, i32) {
    %c0_i32 = arith.constant 0 : i32
    %c0_i32_0 = arith.constant 0 : i32
    %c0_i32_1 = arith.constant 0 : i32
    return %c0_i32, %c0_i32_0 : i32, i32
  }
  func.func @transform_11(%arg0: i32) -> (i32, i32, i32) {
    %c0_i32 = arith.constant 0 : i32
    %c0_i32_0 = arith.constant 0 : i32
    %c0_i32_1 = arith.constant 0 : i32
    %c0_i32_2 = arith.constant 0 : i32
    return %c0_i32, %c0_i32_0, %c0_i32_1 : i32, i32, i32
  }
  func.func @transform_12(%arg0: i32) -> (i32, i32) {
    %c0_i32 = arith.constant 0 : i32
    %c0_i32_0 = arith.constant 0 : i32
    %c0_i32_1 = arith.constant 0 : i32
    return %c0_i32, %c0_i32_0 : i32, i32
  }
  func.func @transform_13(%arg0: i32) -> (i32, i32) {
    %c0_i32 = arith.constant 0 : i32
    %c0_i32_0 = arith.constant 0 : i32
    return %arg0, %c0_i32 : i32, i32
  }
}

</mosaic_0001>

<bundles_post_ra>
// kernel: match_forward.1
= control target key start
LH: loop header
LB: loop body
LE: loop exit
PB: predicated region body
PF: predicated region fallthrough
CT: control target
= control target key end

     0   :  { %s4515_s25 = smov 0   ;;  %s5700_s0 = inlined_call_operand.vmem [shape: bf16[16,16,4], index: 0, kind: input, shape index: {}]   ;;  %s5701_s1 = inlined_call_operand.vmem [shape: bf16[16,16,4], index: 1, kind: input, shape index: {}]   ;;  %s5702_s2 = inlined_call_operand.vmem [shape: f32[16,5], index: 2, kind: input, shape index: {}]   ;;  %s5703_s3 = inlined_call_operand.vmem [shape: bf16[24,40], index: 3, kind: input, shape index: {}]   ;;  %s5704_s4 = inlined_call_operand.vmem [shape: bf16[120,40], index: 4, kind: input, shape index: {}]   ;;  %s5705_s5 = inlined_call_operand.vmem [shape: bf16[120,40], index: 5, kind: input, shape index: {}]   ;;  %s5706_s6 = inlined_call_operand.vmem [shape: bf16[120,32], index: 6, kind: input, shape index: {}]   ;;  %s5707_s7 = inlined_call_operand.vmem [shape: f32[4,3,40], index: 7, kind: input, shape index: {}]   ;;  %s5708_s8 = inlined_call_operand.vmem [shape: bf16[37,64], index: 8, kind: input, shape index: {}]   ;;  %s5709_s9 = inlined_call_operand.vmem [shape: bf16[64,64], index: 9, kind: input, shape index: {}]   ;;  %s5710_s10 = inlined_call_operand.vmem [shape: bf16[64,3], index: 10, kind: input, shape index: {}]   ;;  %s5711_s11 = inlined_call_operand.vmem [shape: f32[2,3,64], index: 11, kind: input, shape index: {}]   ;;  %s5712_s12 = inlined_call_operand.vmem [shape: f32[1,3], index: 12, kind: input, shape index: {}]   ;;  %s5713_s13 = inlined_call_operand.vmem [shape: f32[16,3], index: 13, kind: output, shape index: {}]  }
   0x1 LB: > { %s4521_s26 = sadd.s32 4294967295, %s4432_s25   ;;  %p4009_p0 = scmp.ge.s32.totalorder %s4432_s25, 1  ;;  %s4432_s25 = sphi %s4515_s25, %s23_s25  }
   0x2   : > { %p410_p1 = scmp.lt.s32.totalorder %s4432_s25, 3 }
   0x4   : > { %p411_p2 = pnand %p4009_p0, %p410_p1 }
   0x5   : > { %s4010_s27 = sshll.u32 (!%p411_p2), %s4521_s26, 3  ;;  %s4434_s15 = smov (!%p411_p2), 4   ;;  %v4389_v8 = vld [vmem:[%s5703_s3] sm:$0xff] (!%p411_p2)   ;;  %v4390_v9 = vld [vmem:[%s5703_s3 + $0x8] ss:$0 sps:$4 sm:$0xff] (!%p411_p2)   ;;  %vm874_vm0 = vcmask (!%p411_p2), 1043456  }
   0x6   : > { %414 = sbr.rel (%p411_p2) target bundleno = 2297 (0x8f9), region = 72  ;;  %p465_p3 = scmp.lt.s32.totalorder (!%p411_p2), %s4010_s27, 15  ;;  %4189 = vmatprep.subr.bf16.mxu0 (!%p411_p2), %v4389_v8  ;;  %v876_v11 = vsel (!%p411_p2), %vm874_vm0, %v4390_v9, 0  ;;  %vm615_vm1 = vcmask (!%p411_p2), 31744   ;;  %vm739_vm2 = vcmask (!%p411_p2), 1047552   ;;  %vm704_vm5 = vcmask (!%p411_p2), 1040384  }
   0x7   : > { %4190 = vmatpush3.bf16.msra.mxu0 (!%p411_p2), %v4389_v8  ;;  %s4435_s23 = smov (!%p411_p2), 8   ;;  %vm740_vm3 = vsmask.f32 (!%p411_p2), 7424  ;;  %vm705_vm6 = vsmask.f32 (!%p411_p2), 256  ;;  %s4436_s24 = smov (!%p411_p2), 16  }
   0x8   : > { %4351 = vmatprep.subr.msk.bf16.mxu0 (!%p411_p2), %vm874_vm0, %v4390_v9  ;;  %vm4562_vm4 = vmand (!%p411_p2), %vm739_vm2, %vm740_vm3  ;;  %vm798_vm8 = vcmask (!%p411_p2), 64512   ;;  %vm823_vm9 = vcmask (!%p411_p2), 130048   ;;  %vm857_vm10 = vcmask (!%p411_p2), 195584   ;;  %s4437_s30 = smov (!%p411_p2), 40   ;;  %vm1191_vm11 = vcmask (!%p411_p2), 326656   ;;  %p478_p4 = scmp.lt.s32.totalorder (!%p411_p2), %s4521_s26, 1 }
   0x9   : > { %vm4582_vm7 = vmand (!%p411_p2), %vm704_vm5, %vm705_vm6  ;;  %vm1216_vm12 = vcmask (!%p411_p2), 654336   ;;  %vm1299_vm13 = vcmask (!%p411_p2), 982016   ;;  %vm4440_vm14 = vmmov (!%p411_p2), 0   ;;  %vm3691_vm15 = vcmask (!%p411_p2), 1041408  }
   0xa   : > { %vm3552_vm2 = vcmask (!%p411_p2), 259072   ;;  %vm3641_vm3 = vcmask (!%p411_p2), 1041409   ;;  %vm3645_vm5 = vcmask (!%p411_p2), 1043459   ;;  %vm3647_vm6 = vcmask (!%p411_p2), 1044484  }
   0xb   : > { %4192 = vmatpush3.bf16.msra.mxu0 (!%p411_p2), %v876_v11 }
   0xd   : > { %s5719_s27 = smov (!%p465_p3, %s4010_s27), 15  ;;  %s5721_s26 = smov (!%p478_p4, %s4521_s26), 1 }
   0xe   : > { %s4116_s28 = sshll.u32 %s5719_s27, 3  ;;  %s4016_s27 = sshll.u32 %s5721_s26, 3 }
   0xf   : > { %s476_s14 = scalar_lea.vmem %s5701_s1, %s4116_s28  ;;  %s4532_s18 = scalar_lea.vmem %s5700_s0, %s4116_s28 }
  0x10   : > { %v4373_v0 = vld [vmem:[%s476_s14] sm:$0xff]   ;;  %v4374_v1 = vld [vmem:[%s476_s14 + $0x10] sm:$0xff]   ;;  %v4375_v2 = vld [vmem:[%s476_s14 + $0x8] sm:$0xff]   ;;  %s485_s19 = scalar_lea.vmem %s5713_s13, %s4016_s27 }
  0x11   : > { %599 = vrot.lane.b32.xlu0 %v4373_v0, %s4434_s15  ;;  %603 = vrot.lane.b32.xlu1 %v4374_v1, %s4434_s15  ;;  %v4376_v3 = vld [vmem:[%s476_s14 + $0x18] sm:$0xff]   ;;  %v4377_v4 = vld [vmem:[%s476_s14 + $0x20] sm:$0xff]  }
  0x12   : > { %v4378_v5 = vld [vmem:[%s476_s14 + $0x28] sm:$0xff]   ;;  %v4379_v6 = vld [vmem:[%s476_s14 + $0x30] sm:$0xff]   ;;  %v4380_v7 = vld [vmem:[%s476_s14 + $0x38] sm:$0xff]   ;;  %s4438_s14 = smov 80  }
  0x13   : > { %v4381_v10 = vld [vmem:[%s4532_s18] sm:$0xff]   ;;  %v4382_v12 = vld [vmem:[%s4532_s18 + $0x10] sm:$0xff]   ;;  %v4383_v16 = vld [vmem:[%s4532_s18 + $0x8] sm:$0xff]  }
  0x14   : > { %v4384_v20 = vld [vmem:[%s4532_s18 + $0x18] sm:$0xff]   ;;  %v4385_v30 = vld [vmem:[%s4532_s18 + $0x20] sm:$0xff]   ;;  %v4386_v35 = vld [vmem:[%s4532_s18 + $0x28] sm:$0xff]  }
  0x15   : > { %601 = vrot.lane.b32.xlu0 %v4375_v2, %s4434_s15  ;;  %605 = vrot.lane.b32.xlu1 %v4376_v3, %s4434_s15  ;;  %v4387_v48 = vld [vmem:[%s4532_s18 + $0x30] sm:$0xff]   ;;  %v4388_v52 = vld [vmem:[%s4532_s18 + $0x38] sm:$0xff]  }
  0x19   : > { %607 = vrot.lane.b32.xlu0 %v4377_v4, %s4434_s15  ;;  %609 = vrot.lane.b32.xlu1 %v4378_v5, %s4434_s15 }
  0x1d   : > { %611 = vrot.lane.b32.xlu0 %v4379_v6, %s4434_s15  ;;  %613 = vrot.lane.b32.xlu1 %v4380_v7, %s4434_s15  ;;  %s481_s15 = scalar_lea.vmem %s5702_s2, %s4016_s27 }
  0x83   : > { %v600_v13 = vpop.permute.xlu0 %599  ;;  %v604_v15 = vpop.permute.xlu1 %603 }
  0x84   : > { %v4545_v14 = vsel %vm615_vm1, %v4381_v10, %v600_v13  ;;  %v4553_v19 = vsel %vm615_vm1, %v4382_v12, %v604_v15 }
  0x85   : > { %v648_v17 = vshrl.u32 %v4545_v14, 16  ;;  %v651_v18 = vshll.u32 %v4545_v14, 16  ;;  %758 = vrot.lane.b32.xlu0 %v4545_v14, %s4435_s23  ;;  %v660_v21 = vshrl.u32 %v4553_v19, 16  ;;  %v663_v22 = vshll.u32 %v4553_v19, 16 }
  0x87   : > { %v650_v23 = vrot.slane %v648_v17, 7  ;;  %v602_v24 = vpop.permute.xlu0 %601  ;;  %v715_v25 = vrot.slane %v651_v18, 1  ;;  %v662_v26 = vrot.slane %v660_v21, 7  ;;  %v606_v28 = vpop.permute.xlu1 %605  ;;  %v719_v37 = vrot.slane %v663_v22, 1 }
  0x88   : > { %v4559_v27 = vsel %vm615_vm1, %v4383_v16, %v602_v24  ;;  %v4572_v33 = vsel %vm615_vm1, %v4384_v20, %v606_v28 }
  0x89   : > { %v654_v31 = vshrl.u32 %v4559_v27, 16  ;;  %v657_v32 = vshll.u32 %v4559_v27, 16  ;;  %760 = vrot.lane.b32.xlu1 %v4559_v27, %s4435_s23  ;;  %v716_v34 = vor.u32 %v715_v25, %v648_v17  ;;  %v669_v36 = vshll.u32 %v4572_v33, 16 }
  0x8a   : > { %v4576_v38 = vor.u32 %v651_v18, %v650_v23  ;;  %v4586_v44 = vor.u32 %v663_v22, %v662_v26  ;;  %v666_v45 = vshrl.u32 %v4572_v33, 16  ;;  %v720_v54 = vor.u32 %v719_v37, %v660_v21 }
  0x8b   : > { %v656_v39 = vrot.slane %v654_v31, 7  ;;  %v742_v40 = vsel %vm4562_vm4, %v716_v34, %v4545_v14  ;;  %v717_v41 = vrot.slane %v657_v32, 1  ;;  %v608_v42 = vpop.permute.xlu0 %607  ;;  %v610_v47 = vpop.permute.xlu1 %609  ;;  %v721_v58 = vrot.slane %v669_v36, 1 }
  0x8c   : > { %782 = vrot.lane.b32.xlu0 %v742_v40, %s4436_s24  ;;  %v4591_v46 = vsel %vm615_vm1, %v4385_v30, %v608_v42  ;;  %v4596_v51 = vsel %vm615_vm1, %v4386_v35, %v610_v47  ;;  %v707_v55 = vsel %vm4582_vm7, %v4545_v14, %v4576_v38  ;;  %v668_v61 = vrot.slane %v666_v45, 7 }
  0x8d   : > { %v718_v49 = vor.u32 %v717_v41, %v654_v31  ;;  %v675_v50 = vshll.u32 %v4591_v46, 16  ;;  %v672_v53 = vshrl.u32 %v4591_v46, 16  ;;  %v678_v57 = vshrl.u32 %v4596_v51, 16 }
  0x8e   : > { %v4608_v60 = vor.u32 %v657_v32, %v656_v39  ;;  %v681_v63 = vshll.u32 %v4596_v51, 16  ;;  %v744_v6 = vsel %vm4562_vm4, %v720_v54, %v4553_v19  ;;  %v722_v9 = vor.u32 %v721_v58, %v666_v45 }
  0x8f   : > { %v743_v56 = vsel %vm4562_vm4, %v718_v49, %v4559_v27  ;;  %v612_v59 = vpop.permute.xlu0 %611  ;;  %v674_v62 = vrot.slane %v672_v53, 7  ;;  %v614_v1 = vpop.permute.xlu1 %613  ;;  %v680_v2 = vrot.slane %v678_v57, 7  ;;  %v723_v4 = vrot.slane %v675_v50, 1 }
  0x90   : > { %784 = vrot.lane.b32.xlu1 %v743_v56, %s4436_s24  ;;  %762 = vrot.lane.b32.xlu0 %v4553_v19, %s4435_s23  ;;  %v4615_v0 = vsel %vm615_vm1, %v4387_v48, %v612_v59  ;;  %v4619_v5 = vsel %vm615_vm1, %v4388_v52, %v614_v1  ;;  %v708_v8 = vsel %vm4582_vm7, %v4559_v27, %v4608_v60  ;;  %v725_v16 = vrot.slane %v681_v63, 1 }
  0x91   : > { %v684_v3 = vshrl.u32 %v4615_v0, 16  ;;  %v690_v7 = vshrl.u32 %v4619_v5, 16  ;;  %v687_v11 = vshll.u32 %v4615_v0, 16  ;;  %v709_v12 = vsel %vm4582_vm7, %v4553_v19, %v4586_v44 }
  0x92   : > { %v693_v15 = vshll.u32 %v4619_v5, 16  ;;  %v671_v17 = vor.u32 %v669_v36, %v668_v61  ;;  %v724_v18 = vor.u32 %v723_v4, %v672_v53  ;;  %v677_v20 = vor.u32 %v675_v50, %v674_v62 }
  0x93   : > { %v686_v10 = vrot.slane %v684_v3, 7  ;;  %v692_v13 = vrot.slane %v690_v7, 7  ;;  %v683_v21 = vor.u32 %v681_v63, %v680_v2  ;;  %v745_v19 = vsel %vm4562_vm4, %v722_v9, %v4572_v33  ;;  %v4393_v9 = vld [vmem:[%s5704_s4 + $0x10] sm:$0xff]  }
  0x94   : > { %764 = vrot.lane.b32.xlu1 %v4572_v33, %s4435_s23  ;;  %786 = vrot.lane.b32.xlu0 %v744_v6, %s4436_s24  ;;  %v710_v23 = vsel %vm4582_vm7, %v4572_v33, %v671_v17  ;;  %v711_v25 = vsel %vm4582_vm7, %v4591_v46, %v677_v20  ;;  %v746_v30 = vsel %vm4562_vm4, %v724_v18, %v4591_v46  ;;  %v727_v32 = vrot.slane %v687_v11, 1  ;;  %v843_v17 = vld [vmem:[%s5707_s7] sm:$0x7] }
  0x95   : > { %v689_v22 = vor.u32 %v687_v11, %v686_v10  ;;  %v4641_v24 = vor.u32 %v693_v15, %v692_v13  ;;  %v712_v26 = vsel %vm4582_vm7, %v4596_v51, %v683_v21  ;;  %v726_v31 = vor.u32 %v725_v16, %v678_v57  ;;  %v4394_v10 = vld [vmem:[%s5704_s4 + $0x18] sm:$0xff]   ;;  %v4395_v11 = vld [vmem:[%s5704_s4 + $0x20] sm:$0xff]  }
  0x96   : > { %v728_v34 = vor.u32 %v727_v32, %v684_v3  ;;  %v729_v35 = vrot.slane %v693_v15, 1  ;;  %v844_v13 = vlaneseq  ;;  %vm3550_vm1 = vcmask 261120  }
  0x97   : > { %v713_v27 = vsel %vm4582_vm7, %v4615_v0, %v689_v22  ;;  %v714_v28 = vsel %vm4582_vm7, %v4619_v5, %v4641_v24  ;;  %v747_v33 = vsel %vm4562_vm4, %v726_v31, %v4596_v51 }
  0x98   : > { %788 = vrot.lane.b32.xlu1 %v745_v19, %s4436_s24  ;;  %766 = vrot.lane.b32.xlu0 %v4591_v46, %s4435_s23  ;;  %v748_v36 = vsel %vm4562_vm4, %v728_v34, %v4615_v0  ;;  %v730_v37 = vor.u32 %v729_v35, %v690_v7  ;;  %v4391_v7 = vld [vmem:[%s5704_s4] sm:$0xff]   ;;  %v4731_v15 = vshrl.u32 %v844_v13, 7 }
  0x99   : > { %4209 = vmatprep.subr.bf16.mxu1 %v4391_v7 }
  0x9a   : > { %v749_v39 = vsel %vm4562_vm4, %v730_v37, %v4619_v5  ;;  %4210 = vmatpush3.bf16.msra.mxu1 %v4391_v7  ;;  %v4734_v16 = vsub.s32 0, %v4731_v15  ;;  %v4743_v20 = vsub.s32 1, %v4731_v15  ;;  %v4750_v24 = vsub.s32 2, %v4731_v15 }
  0x9c   : > { %768 = vrot.lane.b32.xlu1 %v4596_v51, %s4435_s23  ;;  %790 = vrot.lane.b32.xlu0 %v746_v30, %s4436_s24  ;;  %v4740_v18 = vrot.slane %v843_v17, %v4734_v16 }
  0xa0   : > { %792 = vrot.lane.b32.xlu1 %v747_v33, %s4436_s24  ;;  %770 = vrot.lane.b32.xlu0 %v4615_v0, %s4435_s23 }
  0xa4   : > { %772 = vrot.lane.b32.xlu1 %v4619_v5, %s4435_s23  ;;  %794 = vrot.lane.b32.xlu0 %v748_v36, %s4436_s24  ;;  %v4763_v36 = vrot.slane %v843_v17, %v4750_v24 }
  0xa8   : > { %796 = vrot.lane.b32.xlu1 %v749_v39, %s4436_s24 }
  0xf7   : > { %v759_v40 = vpop.permute.xlu0 %758 }
  0xf8   : > { %v801_v41 = vsel %vm798_vm8, %v707_v55, %v759_v40 }
  0xfb   : > { %v761_v42 = vpop.permute.xlu1 %760 }
  0xfc   : > { %v804_v46 = vsel %vm798_vm8, %v708_v8, %v761_v42  ;;  %v4392_v8 = vld [vmem:[%s5704_s4 + $0x8] sm:$0xff]  }
  0xfd   : > { %4211 = vmatprep.subr.bf16.mxu1 %v4392_v8 }
  0xfe   : > { %v783_v44 = vpop.permute.xlu0 %782  ;;  %4212 = vmatpush3.bf16.msra.mxu1 %v4392_v8 }
  0xff   : > { %v825_v45 = vsel %vm823_vm9, %v801_v41, %v783_v44  ;;  %4213 = vmatprep.subr.bf16.mxu1 %v4393_v9 }
 0x100   : > { %4193 = vmatprep.mubr.msk.bf16.mxu0 %vm857_vm10, %v825_v45 }
 0x102   : > { %v785_v47 = vpop.permute.xlu1 %784  ;;  %v763_v48 = vpop.permute.xlu0 %762  ;;  %4214 = vmatpush3.bf16.msra.mxu1 %v4393_v9 }
 0x103   : > { %v827_v49 = vsel %vm823_vm9, %v804_v46, %v785_v47  ;;  %v807_v50 = vsel %vm798_vm8, %v709_v12, %v763_v48  ;;  %4215 = vmatprep.subr.bf16.mxu1 %v4394_v10  ;;  %v4396_v12 = vld [vmem:[%s5704_s4 + $0x28] sm:$0xff]  }
 0x104   : > { %4194 = vmatmul.mubr.msk.bf16.vlgmr.msra.gmra.mrb[0].mxu0 %vm857_vm10, %v827_v49 }
 0x106   : > { %v765_v51 = vpop.permute.xlu1 %764  ;;  %v787_v14 = vpop.permute.xlu0 %786  ;;  %4216 = vmatpush3.bf16.msra.mxu1 %v4394_v10 }
 0x107   : > { %v829_v38 = vsel %vm823_vm9, %v807_v50, %v787_v14  ;;  %v810_v52 = vsel %vm798_vm8, %v710_v23, %v765_v51  ;;  %4217 = vmatprep.subr.bf16.mxu1 %v4395_v11  ;;  %v4747_v23 = vrot.slane %v843_v17, %v4743_v20 }
 0x108   : > { %4197 = vmatprep.mubr.msk.bf16.mxu0 %vm857_vm10, %v829_v38 }
 0x10a   : > { %v789_v53 = vpop.permute.xlu1 %788  ;;  %v767_v54 = vpop.permute.xlu0 %766  ;;  %4218 = vmatpush3.bf16.msra.mxu1 %v4395_v11 }
 0x10b   : > { %v831_v55 = vsel %vm823_vm9, %v810_v52, %v789_v53  ;;  %v813_v56 = vsel %vm798_vm8, %v711_v25, %v767_v54  ;;  %4219 = vmatprep.subr.bf16.mxu1 %v4396_v12  ;;  %v4397_v25 = vld [vmem:[%s5704_s4 + $0x30] sm:$0xff]  }
 0x10c   : > { %4198 = vmatmul.mubr.msk.bf16.gmra.mrb[4].mxu0 %vm857_vm10, %v831_v55 }
 0x10e   : > { %v769_v57 = vpop.permute.xlu1 %768  ;;  %v791_v58 = vpop.permute.xlu0 %790  ;;  %4220 = vmatpush3.bf16.msra.mxu1 %v4396_v12 }
 0x10f   : > { %v833_v59 = vsel %vm823_vm9, %v813_v56, %v791_v58  ;;  %v816_v60 = vsel %vm798_vm8, %v712_v26, %v769_v57  ;;  %v4398_v26 = vld [vmem:[%s5704_s4 + $0x38] ss:$0 sps:$4 sm:$0xff]   ;;  %4221 = vmatprep.subr.bf16.mxu1 %v4397_v25 }
 0x110   : > { %4201 = vmatprep.mubr.msk.bf16.mxu0 %vm857_vm10, %v833_v59  ;;  %v1317_v42 = vsel %vm874_vm0, %v4398_v26, 0 }
 0x112   : > { %v793_v61 = vpop.permute.xlu1 %792  ;;  %v771_v62 = vpop.permute.xlu0 %770  ;;  %4222 = vmatpush3.bf16.msra.mxu1 %v4397_v25 }
 0x113   : > { %v835_v63 = vsel %vm823_vm9, %v816_v60, %v793_v61  ;;  %v819_v0 = vsel %vm798_vm8, %v713_v27, %v771_v62  ;;  %4352 = vmatprep.subr.msk.bf16.mxu1 %vm874_vm0, %v4398_v26 }
 0x114   : > { %4202 = vmatmul.mubr.msk.bf16.gmra.mrb[8].mxu0 %vm857_vm10, %v835_v63 }
 0x116   : > { %v773_v1 = vpop.permute.xlu1 %772  ;;  %v795_v2 = vpop.permute.xlu0 %794  ;;  %4224 = vmatpush3.bf16.msra.mxu1 %v1317_v42 }
 0x117   : > { %v837_v3 = vsel %vm823_vm9, %v819_v0, %v795_v2  ;;  %v822_v4 = vsel %vm798_vm8, %v714_v28, %v773_v1  ;;  %vm3651_vm8 = vcmask 1046534  }
 0x118   : > { %4205 = vmatprep.mubr.msk.bf16.mxu0 %vm857_vm10, %v837_v3 }
 0x11a   : > { %v797_v5 = vpop.permute.xlu1 %796 }
 0x11b   : > { %v839_v6 = vsel %vm823_vm9, %v822_v4, %v797_v5  ;;  %vm3653_vm9 = vcmask 1047559  }
 0x11c   : > { %4206 = vmatmul.mubr.msk.bf16.gmra.mrb[12].mxu0 %vm857_vm10, %v839_v6  ;;  %vm3687_vm10 = vcmask 302080  }
 0x1d7   : > { %v4195_v21 = vpop.f32.mrb[0].mxu0 }
 0x1d8   : > { %v921_v22 = vadd.f32 %v4195_v21, %v4740_v18  ;;  %v912_v19 = vpop.f32.mrb[1].mxu0 }
 0x1d9   : > { %v913_v27 = vadd.f32 %v912_v19, %v4740_v18  ;;  %v4196_v28 = vpop.f32.mrb[2].mxu0 }
 0x1da   : > { %v977_v30 = vmax.f32 %v921_v22, 0.0  ;;  %v924_v31 = vadd.f32 %v4196_v28, %v4740_v18  ;;  %v915_v32 = vpop.f32.mrb[3].mxu0 }
 0x1db   : > { %v975_v33 = vmax.f32 %v913_v27, 0.0  ;;  %v916_v34 = vadd.f32 %v915_v32, %v4740_v18 }
 0x1dc   : > { %v997_v35 = vmul.f32 %v4747_v23, %v977_v30  ;;  %v978_v37 = vmax.f32 %v924_v31, 0.0 }
 0x1dd   : > { %v995_v39 = vmul.f32 %v4747_v23, %v975_v33  ;;  %v976_v40 = vmax.f32 %v916_v34, 0.0 }
 0x1de   : > { %v998_v41 = vmul.f32 %v4747_v23, %v978_v37  ;;  %v1017_v46 = vadd.f32 %v4763_v36, %v997_v35 }
 0x1df   : > { %v996_v44 = vmul.f32 %v4747_v23, %v976_v40  ;;  %v4199_v45 = vpop.f32.mrb[4].mxu0  ;;  %v1015_v50 = vadd.f32 %v4763_v36, %v995_v39 }
 0x1e0   : > { %v1018_v47 = vadd.f32 %v4763_v36, %v998_v41  ;;  %v937_v48 = vadd.f32 %v4199_v45, %v4740_v18  ;;  %v928_v49 = vpop.f32.mrb[5].mxu0 }
 0x1e1   : > { %v1016_v51 = vadd.f32 %v4763_v36, %v996_v44  ;;  %v929_v14 = vadd.f32 %v928_v49, %v4740_v18  ;;  %v4200_v38 = vpop.f32.mrb[6].mxu0 }
 0x1e2   : > { %v4776_v52 = vpack.c.bf16 %v1018_v47, %v1017_v46  ;;  %v981_v53 = vmax.f32 %v937_v48, 0.0  ;;  %v940_v54 = vadd.f32 %v4200_v38, %v4740_v18  ;;  %v931_v55 = vpop.f32.mrb[7].mxu0 }
 0x1e3   : > { %v4779_v56 = vpack.c.bf16 %v1016_v51, %v1015_v50  ;;  %v979_v57 = vmax.f32 %v929_v14, 0.0  ;;  %v932_v58 = vadd.f32 %v931_v55, %v4740_v18 }
 0x1e4   : > { %v1001_v59 = vmul.f32 %v4747_v23, %v981_v53  ;;  %v982_v60 = vmax.f32 %v940_v54, 0.0  ;;  %1153 = vrot.lane.b32.xlu1 %v4776_v52, %s4437_s30  ;;  %v1047_v61 = vshrl.u32 %v4776_v52, 16  ;;  %v1050_v62 = vshll.u32 %v4776_v52, 16 }
 0x1e5   : > { %v999_v63 = vmul.f32 %v4747_v23, %v979_v57  ;;  %v980_v0 = vmax.f32 %v932_v58, 0.0  ;;  %1151 = vrot.lane.b32.xlu0 %v4779_v56, %s4437_s30  ;;  %v1040_v1 = vshrl.u32 %v4779_v56, 16  ;;  %v1043_v2 = vshll.u32 %v4779_v56, 16 }
 0x1e6   : > { %v1021_v3 = vadd.f32 %v4763_v36, %v1001_v59  ;;  %v1002_v4 = vmul.f32 %v4747_v23, %v982_v60  ;;  %v1113_v5 = vrot.slane %v1050_v62, 1  ;;  %v1049_v6 = vrot.slane %v1047_v61, 7 }
 0x1e7   : > { %v1019_v7 = vadd.f32 %v4763_v36, %v999_v63  ;;  %v1000_v8 = vmul.f32 %v4747_v23, %v980_v0  ;;  %v4203_v9 = vpop.f32.mrb[8].mxu0  ;;  %v1111_v10 = vrot.slane %v1043_v2, 1  ;;  %v1042_v11 = vrot.slane %v1040_v1, 7 }
 0x1e8   : > { %v1022_v12 = vadd.f32 %v4763_v36, %v1002_v4  ;;  %v953_v13 = vadd.f32 %v4203_v9, %v4740_v18  ;;  %v944_v17 = vpop.f32.mrb[9].mxu0  ;;  %v1114_v21 = vor.u32 %v1113_v5, %v1047_v61  ;;  %v4798_v22 = vor.u32 %v1050_v62, %v1049_v6 }
 0x1e9   : > { %v1020_v19 = vadd.f32 %v4763_v36, %v1000_v8  ;;  %v945_v25 = vadd.f32 %v944_v17, %v4740_v18  ;;  %v4204_v26 = vpop.f32.mrb[10].mxu0  ;;  %v1112_v27 = vor.u32 %v1111_v10, %v1040_v1  ;;  %v4802_v28 = vor.u32 %v1043_v2, %v1042_v11 }
 0x1ea   : > { %v4804_v30 = vpack.c.bf16 %v1022_v12, %v1021_v3  ;;  %v985_v31 = vmax.f32 %v953_v13, 0.0  ;;  %v956_v32 = vadd.f32 %v4204_v26, %v4740_v18  ;;  %v947_v33 = vpop.f32.mrb[11].mxu0  ;;  %v1136_v34 = vsel %vm4562_vm4, %v1114_v21, %v4776_v52 }
 0x1eb   : > { %v4810_v35 = vpack.c.bf16 %v1020_v19, %v1019_v7  ;;  %v983_v37 = vmax.f32 %v945_v25, 0.0  ;;  %v948_v39 = vadd.f32 %v947_v33, %v4740_v18  ;;  %1177 = vrot.lane.b32.xlu1 %v1136_v34, %s4438_s14  ;;  %v1135_v40 = vsel %vm4562_vm4, %v1112_v27, %v4779_v56 }
 0x1ec   : > { %v1005_v41 = vmul.f32 %v4747_v23, %v985_v31  ;;  %v986_v42 = vmax.f32 %v956_v32, 0.0  ;;  %1175 = vrot.lane.b32.xlu0 %v1135_v40, %s4438_s14  ;;  %v1061_v44 = vshrl.u32 %v4804_v30, 16  ;;  %v1064_v45 = vshll.u32 %v4804_v30, 16 }
 0x1ed   : > { %v1003_v46 = vmul.f32 %v4747_v23, %v983_v37  ;;  %v984_v47 = vmax.f32 %v948_v39, 0.0  ;;  %v1054_v48 = vshrl.u32 %v4810_v35, 16  ;;  %v1057_v49 = vshll.u32 %v4810_v35, 16 }
 0x1ee   : > { %v1025_v50 = vadd.f32 %v4763_v36, %v1005_v41  ;;  %v1006_v51 = vmul.f32 %v4747_v23, %v986_v42  ;;  %v1117_v14 = vrot.slane %v1064_v45, 1  ;;  %v1063_v38 = vrot.slane %v1061_v44, 7 }
 0x1ef   : > { %v1023_v53 = vadd.f32 %v4763_v36, %v1003_v46  ;;  %v1004_v54 = vmul.f32 %v4747_v23, %v984_v47  ;;  %1157 = vrot.lane.b32.xlu1 %v4804_v30, %s4437_s30  ;;  %v4207_v55 = vpop.f32.mrb[12].mxu0  ;;  %v1056_v57 = vrot.slane %v1054_v48, 7  ;;  %v1115_v58 = vrot.slane %v1057_v49, 1 }
 0x1f0   : > { %v1026_v59 = vadd.f32 %v4763_v36, %v1006_v51  ;;  %v969_v60 = vadd.f32 %v4207_v55, %v4740_v18  ;;  %v960_v61 = vpop.f32.mrb[13].mxu0  ;;  %1155 = vrot.lane.b32.xlu0 %v4810_v35, %s4437_s30  ;;  %v1118_v62 = vor.u32 %v1117_v14, %v1061_v44  ;;  %v1104_v63 = vsel %vm4582_vm7, %v4776_v52, %v4798_v22 }
 0x1f1   : > { %v1024_v0 = vadd.f32 %v4763_v36, %v1004_v54  ;;  %v961_v1 = vadd.f32 %v960_v61, %v4740_v18  ;;  %v4208_v2 = vpop.f32.mrb[14].mxu0  ;;  %v1116_v3 = vor.u32 %v1115_v58, %v1054_v48  ;;  %v1103_v4 = vsel %vm4582_vm7, %v4779_v56, %v4802_v28 }
 0x1f2   : > { %v4844_v5 = vpack.c.bf16 %v1026_v59, %v1025_v50  ;;  %v989_v6 = vmax.f32 %v969_v60, 0.0  ;;  %v972_v7 = vadd.f32 %v4208_v2, %v4740_v18  ;;  %v963_v8 = vpop.f32.mrb[15].mxu0  ;;  %v1138_v9 = vsel %vm4562_vm4, %v1118_v62, %v4804_v30 }
 0x1f3   : > { %v4850_v10 = vpack.c.bf16 %v1024_v0, %v1023_v53  ;;  %v987_v11 = vmax.f32 %v961_v1, 0.0  ;;  %v964_v12 = vadd.f32 %v963_v8, %v4740_v18  ;;  %1181 = vrot.lane.b32.xlu1 %v1138_v9, %s4438_s14  ;;  %v1137_v13 = vsel %vm4562_vm4, %v1116_v3, %v4810_v35 }
 0x1f4   : > { %v1009_v17 = vmul.f32 %v4747_v23, %v989_v6  ;;  %v990_v21 = vmax.f32 %v972_v7, 0.0  ;;  %1179 = vrot.lane.b32.xlu0 %v1137_v13, %s4438_s14  ;;  %v1075_v19 = vshrl.u32 %v4844_v5, 16  ;;  %v1078_v25 = vshll.u32 %v4844_v5, 16 }
 0x1f5   : > { %v1007_v26 = vmul.f32 %v4747_v23, %v987_v11  ;;  %v988_v27 = vmax.f32 %v964_v12, 0.0  ;;  %v1068_v18 = vshrl.u32 %v4850_v10, 16  ;;  %v1071_v31 = vshll.u32 %v4850_v10, 16 }
 0x1f6   : > { %v1029_v32 = vadd.f32 %v4763_v36, %v1009_v17  ;;  %v1010_v33 = vmul.f32 %v4747_v23, %v990_v21  ;;  %v1121_v34 = vrot.slane %v1078_v25, 1  ;;  %v1077_v37 = vrot.slane %v1075_v19, 7 }
 0x1f7   : > { %v1027_v39 = vadd.f32 %v4763_v36, %v1007_v26  ;;  %v1008_v40 = vmul.f32 %v4747_v23, %v988_v27  ;;  %1161 = vrot.lane.b32.xlu1 %v4844_v5, %s4437_s30  ;;  %v1070_v41 = vrot.slane %v1068_v18, 7  ;;  %v1119_v42 = vrot.slane %v1071_v31, 1 }
 0x1f8   : > { %v1030_v44 = vadd.f32 %v4763_v36, %v1010_v33  ;;  %1159 = vrot.lane.b32.xlu0 %v4850_v10, %s4437_s30  ;;  %v1122_v46 = vor.u32 %v1121_v34, %v1075_v19  ;;  %v1066_v47 = vor.u32 %v1064_v45, %v1063_v38  ;;  %v1059_v48 = vor.u32 %v1057_v49, %v1056_v57 }
 0x1f9   : > { %v1028_v50 = vadd.f32 %v4763_v36, %v1008_v40  ;;  %v1120_v51 = vor.u32 %v1119_v42, %v1068_v18  ;;  %v1080_v14 = vor.u32 %v1078_v25, %v1077_v37  ;;  %v1073_v53 = vor.u32 %v1071_v31, %v1070_v41 }
 0x1fa   : > { %v4874_v54 = vpack.c.bf16 %v1030_v44, %v1029_v32  ;;  %v1140_v23 = vsel %vm4562_vm4, %v1122_v46, %v4844_v5  ;;  %v1106_v55 = vsel %vm4582_vm7, %v4804_v30, %v1066_v47  ;;  %v1105_v45 = vsel %vm4582_vm7, %v4810_v35, %v1059_v48 }
 0x1fb   : > { %v4885_v49 = vpack.c.bf16 %v1028_v50, %v1027_v39  ;;  %1185 = vrot.lane.b32.xlu1 %v1140_v23, %s4438_s14  ;;  %v1139_v36 = vsel %vm4562_vm4, %v1120_v51, %v4850_v10  ;;  %v1108_v38 = vsel %vm4582_vm7, %v4844_v5, %v1080_v14  ;;  %v1107_v30 = vsel %vm4582_vm7, %v4850_v10, %v1073_v53  ;;  %v4399_v14 = vld [vmem:[%s5705_s5] sm:$0xff]   ;;  %v4400_v53 = vld [vmem:[%s5705_s5 + $0x8] sm:$0xff]   ;;  %v4402_v23 = vld [vmem:[%s5705_s5 + $0x18] sm:$0xff]  }
 0x1fc   : > { %1183 = vrot.lane.b32.xlu0 %v1139_v36, %s4438_s14  ;;  %v1089_v35 = vshrl.u32 %v4874_v54, 16  ;;  %v1092_v57 = vshll.u32 %v4874_v54, 16  ;;  %4241 = vmatprep.subr.bf16.mxu0 %v4399_v14 }
 0x1fd   : > { %v1082_v58 = vshrl.u32 %v4885_v49, 16  ;;  %v1085_v59 = vshll.u32 %v4885_v49, 16  ;;  %4242 = vmatpush3.bf16.msra.mxu0 %v4399_v14 }
 0x1fe   : > { %v1125_v60 = vrot.slane %v1092_v57, 1  ;;  %v1091_v61 = vrot.slane %v1089_v35, 7  ;;  %4243 = vmatprep.subr.bf16.mxu0 %v4400_v53 }
 0x1ff   : > { %1165 = vrot.lane.b32.xlu1 %v4874_v54, %s4437_s30  ;;  %v1084_v62 = vrot.slane %v1082_v58, 7  ;;  %v1123_v0 = vrot.slane %v1085_v59, 1 }
 0x200   : > { %1163 = vrot.lane.b32.xlu0 %v4885_v49, %s4437_s30  ;;  %v1126_v1 = vor.u32 %v1125_v60, %v1089_v35  ;;  %v1094_v2 = vor.u32 %v1092_v57, %v1091_v61 }
 0x201   : > { %v1124_v3 = vor.u32 %v1123_v0, %v1082_v58  ;;  %v1087_v5 = vor.u32 %v1085_v59, %v1084_v62  ;;  %4244 = vmatpush3.bf16.msra.mxu0 %v4400_v53  ;;  %v4405_v58 = vld [vmem:[%s5705_s5 + $0x30] sm:$0xff]   ;;  %v4406_v59 = vld [vmem:[%s5705_s5 + $0x38] ss:$0 sps:$4 sm:$0xff]  }
 0x202   : > { %v1142_v6 = vsel %vm4562_vm4, %v1126_v1, %v4874_v54  ;;  %v1110_v7 = vsel %vm4582_vm7, %v4874_v54, %v1094_v2  ;;  %v4401_v54 = vld [vmem:[%s5705_s5 + $0x10] sm:$0xff]  }
 0x203   : > { %1189 = vrot.lane.b32.xlu1 %v1142_v6, %s4438_s14  ;;  %v1141_v8 = vsel %vm4562_vm4, %v1124_v3, %v4885_v49  ;;  %v1109_v9 = vsel %vm4582_vm7, %v4885_v49, %v1087_v5  ;;  %4245 = vmatprep.subr.bf16.mxu0 %v4401_v54  ;;  %v4044_v49 = vld [vmem:[%s5707_s7 + $0x4] sm:$0x7] }
 0x204   : > { %1187 = vrot.lane.b32.xlu0 %v1141_v8, %s4438_s14  ;;  %v4976_v36 = vrot.slane %v4044_v49, %v4734_v16  ;;  %v4980_v35 = vrot.slane %v4044_v49, %v4743_v20  ;;  %v4993_v6 = vrot.slane %v4044_v49, %v4750_v24  ;;  %v1755_v8 = vsel %vm874_vm0, %v4406_v59, 0 }
 0x205   : > { %4246 = vmatpush3.bf16.msra.mxu0 %v4401_v54 }
 0x206   : > { %4247 = vmatprep.subr.bf16.mxu0 %v4402_v23 }
 0x209   : > { %4248 = vmatpush3.bf16.msra.mxu0 %v4402_v23 }
 0x256   : > { %v1154_v10 = vpop.permute.xlu1 %1153 }
 0x257   : > { %v1152_v11 = vpop.permute.xlu0 %1151  ;;  %v1197_v21 = vsel %vm1191_vm11, %v1104_v63, %v1154_v10 }
 0x258   : > { %v1194_v13 = vsel %vm1191_vm11, %v1103_v4, %v1152_v11 }
 0x25d   : > { %v1178_v12 = vpop.permute.xlu1 %1177 }
 0x25e   : > { %v1176_v17 = vpop.permute.xlu0 %1175  ;;  %v1220_v25 = vsel %vm1216_vm12, %v1197_v21, %v1178_v12 }
 0x25f   : > { %v1218_v19 = vsel %vm1216_vm12, %v1194_v13, %v1176_v17 }
 0x260   : > { %4225 = vmatprep.mubr.msk.bf16.mxu1 %vm1299_vm13, %v1218_v19 }
 0x261   : > { %v1158_v26 = vpop.permute.xlu1 %1157  ;;  %4226 = vmatmul.mubr.msk.bf16.vlgmr.msra.gmra.mrb[0].mxu1 %vm1299_vm13, %v1220_v25 }
 0x262   : > { %v1156_v56 = vpop.permute.xlu0 %1155  ;;  %v1203_v18 = vsel %vm1191_vm11, %v1106_v55, %v1158_v26  ;;  %v4403_v55 = vld [vmem:[%s5705_s5 + $0x20] sm:$0xff]  }
 0x263   : > { %v1200_v4 = vsel %vm1191_vm11, %v1105_v45, %v1156_v56  ;;  %4249 = vmatprep.subr.bf16.mxu0 %v4403_v55  ;;  %v4404_v45 = vld [vmem:[%s5705_s5 + $0x28] sm:$0xff]  }
 0x264   : > { %4250 = vmatpush3.bf16.msra.mxu0 %v4403_v55 }
 0x265   : > { %v1182_v28 = vpop.permute.xlu1 %1181  ;;  %4251 = vmatprep.subr.bf16.mxu0 %v4404_v45 }
 0x266   : > { %v1180_v27 = vpop.permute.xlu0 %1179  ;;  %v1224_v22 = vsel %vm1216_vm12, %v1203_v18, %v1182_v28 }
 0x267   : > { %v1222_v52 = vsel %vm1216_vm12, %v1200_v4, %v1180_v27 }
 0x268   : > { %4229 = vmatprep.mubr.msk.bf16.mxu1 %vm1299_vm13, %v1222_v52  ;;  %4252 = vmatpush3.bf16.msra.mxu0 %v4404_v45 }
 0x269   : > { %v1162_v63 = vpop.permute.xlu1 %1161  ;;  %4230 = vmatmul.mubr.msk.bf16.gmra.mrb[4].mxu1 %vm1299_vm13, %v1224_v22  ;;  %4253 = vmatprep.subr.bf16.mxu0 %v4405_v58 }
 0x26a   : > { %v1160_v31 = vpop.permute.xlu0 %1159  ;;  %v1209_v37 = vsel %vm1191_vm11, %v1108_v38, %v1162_v63 }
 0x26b   : > { %v1206_v33 = vsel %vm1191_vm11, %v1107_v30, %v1160_v31 }
 0x26c   : > { %4254 = vmatpush3.bf16.msra.mxu0 %v4405_v58 }
 0x26d   : > { %v1186_v32 = vpop.permute.xlu1 %1185  ;;  %4353 = vmatprep.subr.msk.bf16.mxu0 %vm874_vm0, %v4406_v59 }
 0x26e   : > { %v1184_v34 = vpop.permute.xlu0 %1183  ;;  %v1228_v40 = vsel %vm1216_vm12, %v1209_v37, %v1186_v32 }
 0x26f   : > { %v1226_v39 = vsel %vm1216_vm12, %v1206_v33, %v1184_v34 }
 0x270   : > { %4233 = vmatprep.mubr.msk.bf16.mxu1 %vm1299_vm13, %v1226_v39  ;;  %4256 = vmatpush3.bf16.msra.mxu0 %v1755_v8 }
 0x271   : > { %v1166_v41 = vpop.permute.xlu1 %1165  ;;  %4234 = vmatmul.mubr.msk.bf16.gmra.mrb[8].mxu1 %vm1299_vm13, %v1228_v40 }
 0x272   : > { %v1164_v42 = vpop.permute.xlu0 %1163  ;;  %v1215_v48 = vsel %vm1191_vm11, %v1110_v7, %v1166_v41 }
 0x273   : > { %v1212_v46 = vsel %vm1191_vm11, %v1109_v9, %v1164_v42 }
 0x275   : > { %v1190_v44 = vpop.permute.xlu1 %1189 }
 0x276   : > { %v1188_v47 = vpop.permute.xlu0 %1187  ;;  %v1232_v51 = vsel %vm1216_vm12, %v1215_v48, %v1190_v44 }
 0x277   : > { %v1230_v50 = vsel %vm1216_vm12, %v1212_v46, %v1188_v47 }
 0x278   : > { %4237 = vmatprep.mubr.msk.bf16.mxu1 %vm1299_vm13, %v1230_v50 }
 0x279   : > { %4238 = vmatmul.mubr.msk.bf16.gmra.mrb[12].mxu1 %vm1299_vm13, %v1232_v51 }
 0x334   : > { %v4227_v38 = vpop.f32.mrb[0].mxu1 }
 0x335   : > { %v1362_v30 = vadd.f32 %v4227_v38, %v4976_v36  ;;  %v1353_v57 = vpop.f32.mrb[1].mxu1 }
 0x336   : > { %v1354_v60 = vadd.f32 %v1353_v57, %v4976_v36  ;;  %v4228_v61 = vpop.f32.mrb[2].mxu1 }
 0x337   : > { %v1418_v62 = vmax.f32 %v1362_v30, 0.0  ;;  %v1365_v0 = vadd.f32 %v4228_v61, %v4976_v36  ;;  %v1356_v1 = vpop.f32.mrb[3].mxu1 }
 0x338   : > { %v1416_v2 = vmax.f32 %v1354_v60, 0.0  ;;  %v1357_v3 = vadd.f32 %v1356_v1, %v4976_v36 }
 0x339   : > { %v1438_v5 = vmul.f32 %v4980_v35, %v1418_v62  ;;  %v1419_v7 = vmax.f32 %v1365_v0, 0.0 }
 0x33a   : > { %v1436_v9 = vmul.f32 %v4980_v35, %v1416_v2  ;;  %v1417_v10 = vmax.f32 %v1357_v3, 0.0 }
 0x33b   : > { %v1439_v11 = vmul.f32 %v4980_v35, %v1419_v7  ;;  %v1458_v17 = vadd.f32 %v4993_v6, %v1438_v5 }
 0x33c   : > { %v1437_v12 = vmul.f32 %v4980_v35, %v1417_v10  ;;  %v4231_v13 = vpop.f32.mrb[4].mxu1  ;;  %v1456_v26 = vadd.f32 %v4993_v6, %v1436_v9 }
 0x33d   : > { %v1459_v21 = vadd.f32 %v4993_v6, %v1439_v11  ;;  %v1378_v19 = vadd.f32 %v4231_v13, %v4976_v36  ;;  %v1369_v25 = vpop.f32.mrb[5].mxu1 }
 0x33e   : > { %v1457_v56 = vadd.f32 %v4993_v6, %v1437_v12  ;;  %v1370_v28 = vadd.f32 %v1369_v25, %v4976_v36  ;;  %v4232_v4 = vpop.f32.mrb[6].mxu1 }
 0x33f   : > { %v5006_v27 = vpack.c.bf16 %v1459_v21, %v1458_v17  ;;  %v1422_v18 = vmax.f32 %v1378_v19, 0.0  ;;  %v1381_v52 = vadd.f32 %v4232_v4, %v4976_v36  ;;  %v1372_v22 = vpop.f32.mrb[7].mxu1 }
 0x340   : > { %v5009_v63 = vpack.c.bf16 %v1457_v56, %v1456_v26  ;;  %v1420_v31 = vmax.f32 %v1370_v28, 0.0  ;;  %v1373_v32 = vadd.f32 %v1372_v22, %v4976_v36 }
 0x341   : > { %v1442_v33 = vmul.f32 %v4980_v35, %v1422_v18  ;;  %v1423_v34 = vmax.f32 %v1381_v52, 0.0  ;;  %1594 = vrot.lane.b32.xlu1 %v5006_v27, %s4437_s30  ;;  %v1488_v37 = vshrl.u32 %v5006_v27, 16  ;;  %v1491_v39 = vshll.u32 %v5006_v27, 16 }
 0x342   : > { %v1440_v40 = vmul.f32 %v4980_v35, %v1420_v31  ;;  %v1421_v41 = vmax.f32 %v1373_v32, 0.0  ;;  %1592 = vrot.lane.b32.xlu0 %v5009_v63, %s4437_s30  ;;  %v1481_v42 = vshrl.u32 %v5009_v63, 16  ;;  %v1484_v44 = vshll.u32 %v5009_v63, 16 }
 0x343   : > { %v1462_v46 = vadd.f32 %v4993_v6, %v1442_v33  ;;  %v1443_v47 = vmul.f32 %v4980_v35, %v1423_v34  ;;  %v1554_v48 = vrot.slane %v1491_v39, 1  ;;  %v1490_v50 = vrot.slane %v1488_v37, 7 }
 0x344   : > { %v1460_v51 = vadd.f32 %v4993_v6, %v1440_v40  ;;  %v1441_v14 = vmul.f32 %v4980_v35, %v1421_v41  ;;  %v4235_v53 = vpop.f32.mrb[8].mxu1  ;;  %v1552_v54 = vrot.slane %v1484_v44, 1  ;;  %v1483_v23 = vrot.slane %v1481_v42, 7 }
 0x345   : > { %v1463_v55 = vadd.f32 %v4993_v6, %v1443_v47  ;;  %v1394_v45 = vadd.f32 %v4235_v53, %v4976_v36  ;;  %v1385_v49 = vpop.f32.mrb[9].mxu1  ;;  %v1555_v38 = vor.u32 %v1554_v48, %v1488_v37  ;;  %v5028_v30 = vor.u32 %v1491_v39, %v1490_v50 }
 0x346   : > { %v1461_v57 = vadd.f32 %v4993_v6, %v1441_v14  ;;  %v1386_v58 = vadd.f32 %v1385_v49, %v4976_v36  ;;  %v4236_v59 = vpop.f32.mrb[10].mxu1  ;;  %v1553_v60 = vor.u32 %v1552_v54, %v1481_v42  ;;  %v5032_v61 = vor.u32 %v1484_v44, %v1483_v23 }
 0x347   : > { %v5034_v62 = vpack.c.bf16 %v1463_v55, %v1462_v46  ;;  %v1426_v0 = vmax.f32 %v1394_v45, 0.0  ;;  %v1397_v1 = vadd.f32 %v4236_v59, %v4976_v36  ;;  %v1388_v2 = vpop.f32.mrb[11].mxu1  ;;  %v1577_v3 = vsel %vm4562_vm4, %v1555_v38, %v5006_v27 }
 0x348   : > { %v5040_v5 = vpack.c.bf16 %v1461_v57, %v1460_v51  ;;  %v1424_v7 = vmax.f32 %v1386_v58, 0.0  ;;  %v1389_v8 = vadd.f32 %v1388_v2, %v4976_v36  ;;  %1618 = vrot.lane.b32.xlu1 %v1577_v3, %s4438_s14  ;;  %v1576_v9 = vsel %vm4562_vm4, %v1553_v60, %v5009_v63 }
 0x349   : > { %v1446_v10 = vmul.f32 %v4980_v35, %v1426_v0  ;;  %v1427_v11 = vmax.f32 %v1397_v1, 0.0  ;;  %1616 = vrot.lane.b32.xlu0 %v1576_v9, %s4438_s14  ;;  %v1502_v12 = vshrl.u32 %v5034_v62, 16  ;;  %v1505_v13 = vshll.u32 %v5034_v62, 16 }
 0x34a   : > { %v1444_v17 = vmul.f32 %v4980_v35, %v1424_v7  ;;  %v1425_v21 = vmax.f32 %v1389_v8, 0.0  ;;  %v1495_v19 = vshrl.u32 %v5040_v5, 16  ;;  %v1498_v25 = vshll.u32 %v5040_v5, 16 }
 0x34b   : > { %v1466_v26 = vadd.f32 %v4993_v6, %v1446_v10  ;;  %v1447_v56 = vmul.f32 %v4980_v35, %v1427_v11  ;;  %v1558_v28 = vrot.slane %v1505_v13, 1  ;;  %v1504_v4 = vrot.slane %v1502_v12, 7 }
 0x34c   : > { %v1464_v18 = vadd.f32 %v4993_v6, %v1444_v17  ;;  %v1445_v52 = vmul.f32 %v4980_v35, %v1425_v21  ;;  %1598 = vrot.lane.b32.xlu1 %v5034_v62, %s4437_s30  ;;  %v4239_v22 = vpop.f32.mrb[12].mxu1  ;;  %v1497_v31 = vrot.slane %v1495_v19, 7  ;;  %v1556_v32 = vrot.slane %v1498_v25, 1 }
 0x34d   : > { %v1467_v33 = vadd.f32 %v4993_v6, %v1447_v56  ;;  %v1410_v34 = vadd.f32 %v4239_v22, %v4976_v36  ;;  %v1401_v37 = vpop.f32.mrb[13].mxu1  ;;  %1596 = vrot.lane.b32.xlu0 %v5040_v5, %s4437_s30  ;;  %v1559_v39 = vor.u32 %v1558_v28, %v1502_v12  ;;  %v1545_v40 = vsel %vm4582_vm7, %v5006_v27, %v5028_v30 }
 0x34e   : > { %v1465_v41 = vadd.f32 %v4993_v6, %v1445_v52  ;;  %v1402_v42 = vadd.f32 %v1401_v37, %v4976_v36  ;;  %v4240_v44 = vpop.f32.mrb[14].mxu1  ;;  %v1557_v46 = vor.u32 %v1556_v32, %v1495_v19  ;;  %v1544_v47 = vsel %vm4582_vm7, %v5009_v63, %v5032_v61 }
 0x34f   : > { %v5074_v48 = vpack.c.bf16 %v1467_v33, %v1466_v26  ;;  %v1430_v50 = vmax.f32 %v1410_v34, 0.0  ;;  %v1413_v51 = vadd.f32 %v4240_v44, %v4976_v36  ;;  %v1404_v14 = vpop.f32.mrb[15].mxu1  ;;  %v1579_v53 = vsel %vm4562_vm4, %v1559_v39, %v5034_v62 }
 0x350   : > { %v5080_v54 = vpack.c.bf16 %v1465_v41, %v1464_v18  ;;  %v1428_v23 = vmax.f32 %v1402_v42, 0.0  ;;  %v1405_v55 = vadd.f32 %v1404_v14, %v4976_v36  ;;  %1622 = vrot.lane.b32.xlu1 %v1579_v53, %s4438_s14  ;;  %v1578_v45 = vsel %vm4562_vm4, %v1557_v46, %v5040_v5 }
 0x351   : > { %v1450_v49 = vmul.f32 %v4980_v35, %v1430_v50  ;;  %v1431_v38 = vmax.f32 %v1413_v51, 0.0  ;;  %1620 = vrot.lane.b32.xlu0 %v1578_v45, %s4438_s14  ;;  %v1516_v57 = vshrl.u32 %v5074_v48, 16  ;;  %v1519_v58 = vshll.u32 %v5074_v48, 16 }
 0x352   : > { %v1448_v59 = vmul.f32 %v4980_v35, %v1428_v23  ;;  %v1429_v60 = vmax.f32 %v1405_v55, 0.0  ;;  %v1509_v36 = vshrl.u32 %v5080_v54, 16  ;;  %v1512_v0 = vshll.u32 %v5080_v54, 16 }
 0x353   : > { %v1470_v1 = vadd.f32 %v4993_v6, %v1450_v49  ;;  %v1451_v2 = vmul.f32 %v4980_v35, %v1431_v38  ;;  %v1562_v3 = vrot.slane %v1519_v58, 1  ;;  %v1518_v7 = vrot.slane %v1516_v57, 7 }
 0x354   : > { %v1468_v8 = vadd.f32 %v4993_v6, %v1448_v59  ;;  %v1449_v9 = vmul.f32 %v4980_v35, %v1429_v60  ;;  %1602 = vrot.lane.b32.xlu1 %v5074_v48, %s4437_s30  ;;  %v1511_v10 = vrot.slane %v1509_v36, 7  ;;  %v1560_v11 = vrot.slane %v1512_v0, 1 }
 0x355   : > { %v1471_v12 = vadd.f32 %v4993_v6, %v1451_v2  ;;  %1600 = vrot.lane.b32.xlu0 %v5080_v54, %s4437_s30  ;;  %v1563_v17 = vor.u32 %v1562_v3, %v1516_v57  ;;  %v1507_v21 = vor.u32 %v1505_v13, %v1504_v4  ;;  %v1500_v19 = vor.u32 %v1498_v25, %v1497_v31 }
 0x356   : > { %v1469_v26 = vadd.f32 %v4993_v6, %v1449_v9  ;;  %v1561_v56 = vor.u32 %v1560_v11, %v1509_v36  ;;  %v1521_v28 = vor.u32 %v1519_v58, %v1518_v7  ;;  %v1514_v18 = vor.u32 %v1512_v0, %v1511_v10 }
 0x357   : > { %v5104_v52 = vpack.c.bf16 %v1471_v12, %v1470_v1  ;;  %v1581_v35 = vsel %vm4562_vm4, %v1563_v17, %v5074_v48  ;;  %v1547_v22 = vsel %vm4582_vm7, %v5034_v62, %v1507_v21  ;;  %v1546_v13 = vsel %vm4582_vm7, %v5040_v5, %v1500_v19 }
 0x358   : > { %v1478_v25 = vpack.c.bf16 %v1469_v26, %v1468_v8  ;;  %1626 = vrot.lane.b32.xlu1 %v1581_v35, %s4438_s14  ;;  %v1580_v6 = vsel %vm4562_vm4, %v1561_v56, %v5080_v54  ;;  %v1549_v4 = vsel %vm4582_vm7, %v5074_v48, %v1521_v28  ;;  %v1548_v31 = vsel %vm4582_vm7, %v5080_v54, %v1514_v18  ;;  %v4407_v26 = vld [vmem:[%s5706_s6] sm:$0xff]   ;;  %v4408_v28 = vld [vmem:[%s5706_s6 + $0x8] sm:$0xff]  }
 0x359   : > { %1624 = vrot.lane.b32.xlu0 %v1580_v6, %s4438_s14  ;;  %v1530_v62 = vshrl.u32 %v5104_v52, 16  ;;  %v1533_v5 = vshll.u32 %v5104_v52, 16  ;;  %v4439_v56 = vmov 0.0   ;;  %v4061_v18 = vld [vmem:[%s5707_s7 + $0x8] sm:$0x7] }
 0x35a   : > { %v1523_v32 = vshrl.u32 %v1478_v25, 16  ;;  %v1526_v33 = vshll.u32 %v1478_v25, 16  ;;  %4273 = vmatprep.subr.bf16.mxu1 %v4439_v56  ;;  %4317 = vmatprep.subr.bf16.mxu0 %v4439_v56 }
 0x35b   : > { %v1566_v34 = vrot.slane %v1533_v5, 1  ;;  %v1532_v37 = vrot.slane %v1530_v62, 7  ;;  %4274 = vmatpush3.bf16.msra.mxu1 %v4407_v26  ;;  %4289 = vmatprep.mubr.msk.bf16.mxu1 %vm4440_vm14, %v4439_v56 }
 0x35c   : > { %1606 = vrot.lane.b32.xlu1 %v5104_v52, %s4437_s30  ;;  %v1525_v39 = vrot.slane %v1523_v32, 7  ;;  %v1564_v41 = vrot.slane %v1526_v33, 1  ;;  %4275 = vmatprep.subr.bf16.mxu1 %v4439_v56 }
 0x35d   : > { %1604 = vrot.lane.b32.xlu0 %v1478_v25, %s4437_s30  ;;  %v1567_v42 = vor.u32 %v1566_v34, %v1530_v62  ;;  %v1535_v44 = vor.u32 %v1533_v5, %v1532_v37 }
 0x35e   : > { %v1565_v46 = vor.u32 %v1564_v41, %v1523_v32  ;;  %v1528_v48 = vor.u32 %v1526_v33, %v1525_v39  ;;  %v5205_v39 = vrot.slane %v4061_v18, %v4750_v24 }
 0x35f   : > { %v1583_v50 = vsel %vm4562_vm4, %v1567_v42, %v5104_v52  ;;  %v1551_v51 = vsel %vm4582_vm7, %v5104_v52, %v1535_v44  ;;  %4276 = vmatpush3.bf16.msra.mxu1 %v4408_v28  ;;  %v5191_v52 = vrot.slane %v4061_v18, %v4734_v16 }
 0x360   : > { %1630 = vrot.lane.b32.xlu1 %v1583_v50, %s4438_s14  ;;  %v1582_v14 = vsel %vm4562_vm4, %v1565_v46, %v1478_v25  ;;  %v1550_v53 = vsel %vm4582_vm7, %v1478_v25, %v1528_v48  ;;  %4277 = vmatprep.subr.bf16.mxu1 %v4439_v56  ;;  %vm3643_vm4 = vcmask 1042434   ;;  %vm3649_vm7 = vcmask 1045509  }
 0x361   : > { %1628 = vrot.lane.b32.xlu0 %v1582_v14, %s4438_s14 }
 0x3b3   : > { %v1595_v54 = vpop.permute.xlu1 %1594 }
 0x3b4   : > { %v1593_v23 = vpop.permute.xlu0 %1592  ;;  %v1637_v29 = vsel %vm1191_vm11, %v1545_v40, %v1595_v54 }
 0x3b5   : > { %v1634_v45 = vsel %vm1191_vm11, %v1544_v47, %v1593_v23 }
 0x3ba   : > { %v1619_v55 = vpop.permute.xlu1 %1618 }
 0x3bb   : > { %v1617_v49 = vpop.permute.xlu0 %1616  ;;  %v1659_v57 = vsel %vm1216_vm12, %v1637_v29, %v1619_v55 }
 0x3bc   : > { %v1657_v38 = vsel %vm1216_vm12, %v1634_v45, %v1617_v49 }
 0x3bd   : > { %4257 = vmatprep.mubr.msk.bf16.mxu0 %vm1299_vm13, %v1657_v38 }
 0x3be   : > { %v1599_v58 = vpop.permute.xlu1 %1598  ;;  %4258 = vmatmul.mubr.msk.bf16.vlgmr.msra.gmra.mrb[16].mxu0 %vm1299_vm13, %v1659_v57 }
 0x3bf   : > { %v1597_v63 = vpop.permute.xlu0 %1596  ;;  %v1643_v43 = vsel %vm1191_vm11, %v1547_v22, %v1599_v58 }
 0x3c0   : > { %v1640_v47 = vsel %vm1191_vm11, %v1546_v13, %v1597_v63  ;;  %v5195_v13 = vrot.slane %v4061_v18, %v4743_v20 }
 0x3c2   : > { %v1623_v61 = vpop.permute.xlu1 %1622 }
 0x3c3   : > { %v1621_v59 = vpop.permute.xlu0 %1620  ;;  %v1663_v30 = vsel %vm1216_vm12, %v1643_v43, %v1623_v61 }
 0x3c4   : > { %v1661_v27 = vsel %vm1216_vm12, %v1640_v47, %v1621_v59 }
 0x3c5   : > { %4261 = vmatprep.mubr.msk.bf16.mxu0 %vm1299_vm13, %v1661_v27 }
 0x3c6   : > { %v1603_v40 = vpop.permute.xlu1 %1602  ;;  %4262 = vmatmul.mubr.msk.bf16.gmra.mrb[20].mxu0 %vm1299_vm13, %v1663_v30 }
 0x3c7   : > { %v1601_v60 = vpop.permute.xlu0 %1600  ;;  %v1649_v2 = vsel %vm1191_vm11, %v1549_v4, %v1603_v40 }
 0x3c8   : > { %v1646_v0 = vsel %vm1191_vm11, %v1548_v31, %v1601_v60  ;;  %v4409_v31 = vld [vmem:[%s5706_s6 + $0x10] sm:$0xff]   ;;  %v4410_v60 = vld [vmem:[%s5706_s6 + $0x18] sm:$0xff]  }
 0x3c9   : > { %4278 = vmatpush3.bf16.msra.mxu1 %v4409_v31 }
 0x3ca   : > { %v1627_v36 = vpop.permute.xlu1 %1626  ;;  %4279 = vmatprep.subr.bf16.mxu1 %v4439_v56 }
 0x3cb   : > { %v1625_v1 = vpop.permute.xlu0 %1624  ;;  %v1667_v7 = vsel %vm1216_vm12, %v1649_v2, %v1627_v36 }
 0x3cc   : > { %v1665_v3 = vsel %vm1216_vm12, %v1646_v0, %v1625_v1 }
 0x3cd   : > { %4265 = vmatprep.mubr.msk.bf16.mxu0 %vm1299_vm13, %v1665_v3  ;;  %4280 = vmatpush3.bf16.msra.mxu1 %v4410_v60 }
 0x3ce   : > { %v1607_v8 = vpop.permute.xlu1 %1606  ;;  %4266 = vmatmul.mubr.msk.bf16.gmra.mrb[24].mxu0 %vm1299_vm13, %v1667_v7  ;;  %4281 = vmatprep.subr.bf16.mxu1 %v4439_v56 }
 0x3cf   : > { %v1605_v9 = vpop.permute.xlu0 %1604  ;;  %v1655_v17 = vsel %vm1191_vm11, %v1551_v51, %v1607_v8 }
 0x3d0   : > { %v1652_v11 = vsel %vm1191_vm11, %v1550_v53, %v1605_v9 }
 0x3d2   : > { %v1631_v10 = vpop.permute.xlu1 %1630 }
 0x3d3   : > { %v1629_v12 = vpop.permute.xlu0 %1628  ;;  %v1671_v19 = vsel %vm1216_vm12, %v1655_v17, %v1631_v10 }
 0x3d4   : > { %v1669_v21 = vsel %vm1216_vm12, %v1652_v11, %v1629_v12 }
 0x3d5   : > { %4269 = vmatprep.mubr.msk.bf16.mxu0 %vm1299_vm13, %v1669_v21 }
 0x3d6   : > { %4270 = vmatmul.mubr.msk.bf16.gmra.mrb[28].mxu0 %vm1299_vm13, %v1671_v19 }
 0x3d7   : > { %4323 = vmatprep.mubr.msk.bf16.mxu0 %vm4440_vm14, %v4439_v56 }
 0x491   : > { %v4259_v35 = vpop.f32.mrb[16].mxu0 }
 0x492   : > { %v1800_v22 = vadd.f32 %v4259_v35, %v5191_v52  ;;  %v1791_v25 = vpop.f32.mrb[17].mxu0  ;;  %v4411_v35 = vld [vmem:[%s5706_s6 + $0x20] sm:$0xff]  }
 0x493   : > { %v1792_v6 = vadd.f32 %v1791_v25, %v5191_v52  ;;  %v4260_v4 = vpop.f32.mrb[18].mxu0  ;;  %4282 = vmatpush3.bf16.msra.mxu1 %v4411_v35 }
 0x494   : > { %v1856_v62 = vmax.f32 %v1800_v22, 0.0  ;;  %v1803_v5 = vadd.f32 %v4260_v4, %v5191_v52  ;;  %v1794_v32 = vpop.f32.mrb[19].mxu0  ;;  %4283 = vmatprep.subr.bf16.mxu1 %v4439_v56 }
 0x495   : > { %v1854_v33 = vmax.f32 %v1792_v6, 0.0  ;;  %v1795_v34 = vadd.f32 %v1794_v32, %v5191_v52 }
 0x496   : > { %v1876_v37 = vmul.f32 %v5195_v13, %v1856_v62  ;;  %v1857_v41 = vmax.f32 %v1803_v5, 0.0 }
 0x497   : > { %v1874_v42 = vmul.f32 %v5195_v13, %v1854_v33  ;;  %v1855_v44 = vmax.f32 %v1795_v34, 0.0 }
 0x498   : > { %v1877_v46 = vmul.f32 %v5195_v13, %v1857_v41  ;;  %v1896_v51 = vadd.f32 %v5205_v39, %v1876_v37 }
 0x499   : > { %v1875_v48 = vmul.f32 %v5195_v13, %v1855_v44  ;;  %v4263_v50 = vpop.f32.mrb[20].mxu0  ;;  %v1894_v23 = vadd.f32 %v5205_v39, %v1874_v42 }
 0x49a   : > { %v1897_v14 = vadd.f32 %v5205_v39, %v1877_v46  ;;  %v1816_v53 = vadd.f32 %v4263_v50, %v5191_v52  ;;  %v1807_v54 = vpop.f32.mrb[21].mxu0  ;;  %v4412_v46 = vld [vmem:[%s5706_s6 + $0x28] sm:$0xff]  }
 0x49b   : > { %v1895_v55 = vadd.f32 %v5205_v39, %v1875_v48  ;;  %v1808_v45 = vadd.f32 %v1807_v54, %v5191_v52  ;;  %v4264_v49 = vpop.f32.mrb[22].mxu0  ;;  %4284 = vmatpush3.bf16.msra.mxu1 %v4412_v46 }
 0x49c   : > { %v5217_v29 = vpack.c.bf16 %v1897_v14, %v1896_v51  ;;  %v1860_v38 = vmax.f32 %v1816_v53, 0.0  ;;  %v1819_v57 = vadd.f32 %v4264_v49, %v5191_v52  ;;  %v1810_v58 = vpop.f32.mrb[23].mxu0  ;;  %4285 = vmatprep.subr.bf16.mxu1 %v4439_v56 }
 0x49d   : > { %v5220_v63 = vpack.c.bf16 %v1895_v55, %v1894_v23  ;;  %v1858_v61 = vmax.f32 %v1808_v45, 0.0  ;;  %v1811_v47 = vadd.f32 %v1810_v58, %v5191_v52 }
 0x49e   : > { %v1880_v59 = vmul.f32 %v5195_v13, %v1860_v38  ;;  %v1861_v43 = vmax.f32 %v1819_v57, 0.0  ;;  %v1928_v1 = vshll.u32 %v5217_v29, 16  ;;  %v1999_v7 = vrot.slane %v5217_v29, 1 }
 0x49f   : > { %v1878_v27 = vmul.f32 %v5195_v13, %v1858_v61  ;;  %v1859_v30 = vmax.f32 %v1811_v47, 0.0  ;;  %v1998_v40 = vrot.slane %v5220_v63, 1  ;;  %v1921_v0 = vshll.u32 %v5220_v63, 16 }
 0x4a0   : > { %v1881_v36 = vmul.f32 %v5195_v13, %v1861_v43  ;;  %v1919_v8 = vshrl.u32 %v5220_v63, 16  ;;  %v1900_v9 = vadd.f32 %v5205_v39, %v1880_v59  ;;  %v1930_v18 = vrot.slane %v1928_v1, 1 }
 0x4a1   : > { %v1879_v2 = vmul.f32 %v5195_v13, %v1859_v30  ;;  %v4267_v3 = vpop.f32.mrb[24].mxu0  ;;  %2006 = vrot.lane.b32.xlu1 %v1998_v40, %s4438_s14  ;;  %v1923_v17 = vrot.slane %v1921_v0, 1  ;;  %v1898_v21 = vadd.f32 %v5205_v39, %v1878_v27  ;;  %v1926_v37 = vshrl.u32 %v5217_v29, 16  ;;  %v4413_v30 = vld [vmem:[%s5706_s6 + $0x30] sm:$0xff]  }
 0x4a2   : > { %v1901_v10 = vadd.f32 %v5205_v39, %v1881_v36  ;;  %v1832_v11 = vadd.f32 %v4267_v3, %v5191_v52  ;;  %v1823_v12 = vpop.f32.mrb[25].mxu0  ;;  %4286 = vmatpush3.bf16.msra.mxu1 %v4413_v30 }
 0x4a3   : > { %v1899_v19 = vadd.f32 %v5205_v39, %v1879_v2  ;;  %v1824_v26 = vadd.f32 %v1823_v12, %v5191_v52  ;;  %v4268_v28 = vpop.f32.mrb[26].mxu0  ;;  %v1924_v31 = vor.u32 %v1923_v17, %v1919_v8  ;;  %v1931_v50 = vor.u32 %v1930_v18, %v1926_v37  ;;  %4287 = vmatprep.subr.bf16.mxu1 %v4439_v56 }
 0x4a4   : > { %v5246_v22 = vpack.c.bf16 %v1901_v10, %v1900_v9  ;;  %v1864_v25 = vmax.f32 %v1832_v11, 0.0  ;;  %v1835_v6 = vadd.f32 %v4268_v28, %v5191_v52  ;;  %v1826_v4 = vpop.f32.mrb[27].mxu0  ;;  %v4414_v11 = vld [vmem:[%s5706_s6 + $0x38] ss:$0 sps:$4 sm:$0xff]  }
 0x4a5   : > { %v5249_v62 = vpack.c.bf16 %v1899_v19, %v1898_v21  ;;  %v1862_v5 = vmax.f32 %v1824_v26, 0.0  ;;  %v1827_v32 = vadd.f32 %v1826_v4, %v5191_v52  ;;  %2008 = vrot.lane.b32.xlu1 %v1999_v7, %s4438_s14  ;;  %1974 = vrot.lane.b32.xlu0 %v1924_v31, %s4437_s30 }
 0x4a6   : > { %v1884_v33 = vmul.f32 %v5195_v13, %v1864_v25  ;;  %v1865_v34 = vmax.f32 %v1835_v6, 0.0  ;;  %v1942_v14 = vshll.u32 %v5246_v22, 16  ;;  %v2001_v23 = vrot.slane %v5246_v22, 1 }
 0x4a7   : > { %v1882_v41 = vmul.f32 %v5195_v13, %v1862_v5  ;;  %v1863_v42 = vmax.f32 %v1827_v32, 0.0  ;;  %v2000_v44 = vrot.slane %v5249_v62, 1  ;;  %v1935_v51 = vshll.u32 %v5249_v62, 16 }
 0x4a8   : > { %v1885_v48 = vmul.f32 %v5195_v13, %v1865_v34  ;;  %v1933_v55 = vshrl.u32 %v5249_v62, 16  ;;  %v1904_v45 = vadd.f32 %v5205_v39, %v1884_v33  ;;  %v1944_v27 = vrot.slane %v1942_v14, 1 }
 0x4a9   : > { %v1883_v53 = vmul.f32 %v5195_v13, %v1863_v42  ;;  %v4271_v54 = vpop.f32.mrb[28].mxu0  ;;  %2010 = vrot.lane.b32.xlu1 %v2000_v44, %s4438_s14  ;;  %1976 = vrot.lane.b32.xlu0 %v1931_v50, %s4437_s30  ;;  %v1937_v58 = vrot.slane %v1935_v51, 1  ;;  %v1902_v61 = vadd.f32 %v5205_v39, %v1882_v41  ;;  %v1940_v10 = vshrl.u32 %v5246_v22, 16 }
 0x4aa   : > { %v1905_v49 = vadd.f32 %v5205_v39, %v1885_v48  ;;  %v1848_v38 = vadd.f32 %v4271_v54, %v5191_v52  ;;  %v1839_v57 = vpop.f32.mrb[29].mxu0  ;;  %v2877_v25 = vsel %vm874_vm0, %v4414_v11, 0  ;;  %vm3692_vm0 = vcmask 1042432  }
 0x4ab   : > { %v1903_v47 = vadd.f32 %v5205_v39, %v1883_v53  ;;  %v1840_v59 = vadd.f32 %v1839_v57, %v5191_v52  ;;  %v4272_v43 = vpop.f32.mrb[30].mxu0  ;;  %v1938_v1 = vor.u32 %v1937_v58, %v1933_v55  ;;  %v1945_v19 = vor.u32 %v1944_v27, %v1940_v10  ;;  %4288 = vmatpush3.bf16.msra.mxu1 %v2877_v25 }
 0x4ac   : > { %v5280_v40 = vpack.c.bf16 %v1905_v49, %v1904_v45  ;;  %v1868_v60 = vmax.f32 %v1848_v38, 0.0  ;;  %v1851_v36 = vadd.f32 %v4272_v43, %v5191_v52  ;;  %v1842_v0 = vpop.f32.mrb[31].mxu0  ;;  %v3632_v45 = vld [vmem:[%s481_s15] sm:$0xff]  ;;  %v4442_v49 = vmov 1966171168  }
 0x4ad   : > { %v5283_v2 = vpack.c.bf16 %v1903_v47, %v1902_v61  ;;  %v1866_v3 = vmax.f32 %v1840_v59, 0.0  ;;  %v1843_v7 = vadd.f32 %v1842_v0, %v5191_v52  ;;  %2012 = vrot.lane.b32.xlu1 %v2001_v23, %s4438_s14  ;;  %1978 = vrot.lane.b32.xlu0 %v1938_v1, %s4437_s30  ;;  %v2064_v38 = vunpack.c.l.s4 %v4442_v49 }
 0x4ae   : > { %v1888_v8 = vmul.f32 %v5195_v13, %v1868_v60  ;;  %v1869_v9 = vmax.f32 %v1851_v36, 0.0  ;;  %v1956_v28 = vshll.u32 %v5280_v40, 16 }
 0x4af   : > { %v1886_v12 = vmul.f32 %v5195_v13, %v1866_v3  ;;  %v1867_v17 = vmax.f32 %v1843_v7, 0.0  ;;  %v2002_v52 = vrot.slane %v5283_v2, 1  ;;  %v1949_v26 = vshll.u32 %v5283_v2, 16 }
 0x4b0   : > { %v1889_v21 = vmul.f32 %v5195_v13, %v1869_v9  ;;  %v1947_v35 = vshrl.u32 %v5283_v2, 16  ;;  %v1908_v6 = vadd.f32 %v5205_v39, %v1888_v8  ;;  %v1958_v37 = vrot.slane %v1956_v28, 1 }
 0x4b1   : > { %v1887_v18 = vmul.f32 %v5195_v13, %v1867_v17  ;;  %2014 = vrot.lane.b32.xlu1 %v2002_v52, %s4438_s14  ;;  %1980 = vrot.lane.b32.xlu0 %v1945_v19, %s4437_s30  ;;  %v1951_v31 = vrot.slane %v1949_v26, 1  ;;  %v1906_v5 = vadd.f32 %v5205_v39, %v1886_v12  ;;  %v2003_v13 = vrot.slane %v5280_v40, 1 }
 0x4b2   : > { %v1909_v4 = vadd.f32 %v5205_v39, %v1889_v21  ;;  %v2065_v57 = vunpack.c.0.s8 %v2064_v38 }
 0x4b3   : > { %v1907_v32 = vadd.f32 %v5205_v39, %v1887_v18  ;;  %v1952_v34 = vor.u32 %v1951_v31, %v1947_v35  ;;  %v1954_v39 = vshrl.u32 %v5280_v40, 16 }
 0x4b4   : > { %v5313_v33 = vpack.c.bf16 %v1909_v4, %v1908_v6  ;;  %v5342_v58 = vsub.s32 %v2065_v57, %v4731_v15 }
 0x4b5   : > { %v5315_v41 = vpack.c.bf16 %v1907_v32, %v1906_v5  ;;  %2016 = vrot.lane.b32.xlu1 %v2003_v13, %s4438_s14  ;;  %1982 = vrot.lane.b32.xlu0 %v1952_v34, %s4437_s30  ;;  %v1959_v46 = vor.u32 %v1958_v37, %v1954_v39 }
 0x4b6   : > { %v1970_v48 = vshll.u32 %v5313_v33, 16  ;;  %v2005_v14 = vrot.slane %v5313_v33, 1  ;;  %v1968_v23 = vshrl.u32 %v5313_v33, 16 }
 0x4b7   : > { %v2004_v42 = vrot.slane %v5315_v41, 1  ;;  %v1963_v44 = vshll.u32 %v5315_v41, 16  ;;  %v1961_v50 = vshrl.u32 %v5315_v41, 16 }
 0x4b8   : > { %v1972_v54 = vrot.slane %v1970_v48, 1 }
 0x4b9   : > { %2018 = vrot.lane.b32.xlu1 %v2004_v42, %s4438_s14  ;;  %v1965_v51 = vrot.slane %v1963_v44, 1  ;;  %1984 = vrot.lane.b32.xlu0 %v1959_v46, %s4437_s30 }
 0x4ba   : > { %v1973_v55 = vor.u32 %v1972_v54, %v1968_v23 }
 0x4bb   : > { %v1966_v53 = vor.u32 %v1965_v51, %v1961_v50 }
 0x4bd   : > { %2020 = vrot.lane.b32.xlu1 %v2005_v14, %s4438_s14  ;;  %1986 = vrot.lane.b32.xlu0 %v1966_v53, %s4437_s30  ;;  %s4441_s14 = smov 32  }
 0x4c1   : > { %1988 = vrot.lane.b32.xlu0 %v1973_v55, %s4437_s30 }
 0x4c5   : > { %3657 = vrot.lane.b32.xlu0 %v3632_v45, %s4441_s14 }
 0x513   : > { %v2007_v61 = vpop.permute.xlu1 %2006 }
 0x517   : > { %v1975_v47 = vpop.permute.xlu0 %1974  ;;  %v2009_v36 = vpop.permute.xlu1 %2008 }
 0x518   : > { %v2023_v59 = vsel %vm1191_vm11, %v5220_v63, %v1975_v47 }
 0x519   : > { %v2039_v43 = vsel %vm1216_vm12, %v2023_v59, %v2007_v61 }
 0x51a   : > { %v2062_v27 = vcombine.high %v2039_v43, %v2039_v43  ;;  %v2069_v30 = vrot.slane %v2039_v43, %v5342_v58 }
 0x51b   : > { %v1977_v60 = vpop.permute.xlu0 %1976  ;;  %v2011_v32 = vpop.permute.xlu1 %2010 }
 0x51c   : > { %v2076_v0 = vrot.slane %v2062_v27, %v5342_v58  ;;  %v2077_v1 = vcombine.high %v2069_v30, %v2069_v30  ;;  %v2025_v3 = vsel %vm1191_vm11, %v5217_v29, %v1977_v60  ;;  %v2085_v9 = vrot.slane %v2069_v30, %v5342_v58 }
 0x51d   : > { %v2041_v7 = vsel %vm1216_vm12, %v2025_v3, %v2009_v36 }
 0x51e   : > { %v2078_v8 = vcombine.high %v2076_v0, %v2076_v0  ;;  %v2092_v63 = vrot.slane %v2076_v0, %v5342_v58  ;;  %v2099_v10 = vrot.slane %v2077_v1, %v5342_v58  ;;  %v2117_v11 = vrot.slane %v2041_v7, %v5342_v58 }
 0x51f   : > { %v1979_v25 = vpop.permute.xlu0 %1978  ;;  %v2110_v42 = vcombine.high %v2041_v7, %v2041_v7  ;;  %v2013_v51 = vpop.permute.xlu1 %2012 }
 0x520   : > { %v2106_v12 = vrot.slane %v2078_v8, %v5342_v58  ;;  %v2467_v17 = vcombine.low %v2085_v9, %v2099_v10  ;;  %v4079_v52 = vcombine.high %v2085_v9, %v2099_v10  ;;  %v2108_v21 = vcombine.high %v2092_v63, %v2092_v63 }
 0x521   : > { %v2133_v19 = vrot.slane %v2117_v11, %v5342_v58  ;;  %v2027_v5 = vsel %vm1191_vm11, %v5249_v62, %v1979_v25  ;;  %v2125_v46 = vcombine.high %v2117_v11, %v2117_v11  ;;  %v2124_v14 = vrot.slane %v2110_v42, %v5342_v58 }
 0x522   : > { %v2469_v26 = vcombine.low %v2092_v63, %v2106_v12  ;;  %v2477_v29 = vrot.slane %v2467_v17, %v5342_v58  ;;  %v2484_v28 = vrot.slane %v4079_v52, %v5342_v58  ;;  %v2043_v39 = vsel %vm1216_vm12, %v2027_v5, %v2011_v32 }
 0x523   : > { %v2470_v35 = vcombine.low %v2108_v21, %v2133_v19  ;;  %v1981_v37 = vpop.permute.xlu0 %1980  ;;  %v2158_v50 = vcombine.high %v2043_v39, %v2043_v39  ;;  %v2165_v62 = vrot.slane %v2043_v39, %v5342_v58  ;;  %v2147_v23 = vrot.slane %v2125_v46, %v5342_v58  ;;  %v2015_v47 = vpop.permute.xlu1 %2014 }
 0x524   : > { %v2491_v18 = vrot.slane %v2469_v26, %v5342_v58  ;;  %v2499_v6 = vcombine.low %v2477_v29, %v2484_v28  ;;  %v2029_v48 = vsel %vm1191_vm11, %v5246_v22, %v1981_v37  ;;  %v2126_v49 = vcombine.high %v2124_v14, %v2124_v14 }
 0x525   : > { %v2498_v4 = vrot.slane %v2470_v35, %v5342_v58  ;;  %v2045_v53 = vsel %vm1216_vm12, %v2029_v48, %v2013_v51  ;;  %v2172_v55 = vrot.slane %v2158_v50, %v5342_v58  ;;  %v2173_v45 = vcombine.high %v2165_v62, %v2165_v62 }
 0x526   : > { %v2507_v13 = vrot.slane %v2499_v6, %v5342_v58  ;;  %v2213_v22 = vrot.slane %v2045_v53, %v5342_v58  ;;  %v2140_v38 = vrot.slane %v2124_v14, %v5342_v58  ;;  %v2157_v61 = vcombine.high %v2147_v23, %v2147_v23 }
 0x527   : > { %v2500_v31 = vcombine.low %v2491_v18, %v2498_v4  ;;  %v1983_v54 = vpop.permute.xlu0 %1982  ;;  %v2155_v59 = vcombine.high %v2133_v19, %v2133_v19  ;;  %v2174_v43 = vcombine.high %v2172_v55, %v2172_v55  ;;  %v2195_v30 = vrot.slane %v2173_v45, %v5342_v58  ;;  %v2017_v19 = vpop.permute.xlu1 %2016 }
 0x528   : > { %v2031_v57 = vsel %vm1191_vm11, %v5283_v2, %v1983_v54  ;;  %v2221_v60 = vcombine.high %v2213_v22, %v2213_v22  ;;  %v2229_v36 = vrot.slane %v2213_v22, %v5342_v58  ;;  %v2154_v1 = vrot.slane %v2126_v49, %v5342_v58 }
 0x529   : > { %v2514_v34 = vrot.slane %v2500_v31, %v5342_v58  ;;  %v2047_v0 = vsel %vm1216_vm12, %v2031_v57, %v2015_v47  ;;  %v2156_v3 = vcombine.high %v2140_v38, %v2140_v38  ;;  %v2206_v7 = vcombine.high %v2045_v53, %v2045_v53 }
 0x52a   : > { %v2517_v8 = vcombine.low %v2157_v61, %v2140_v38  ;;  %v2181_v9 = vrot.slane %v2165_v62, %v5342_v58  ;;  %v2188_v2 = vrot.slane %v2172_v55, %v5342_v58  ;;  %v2202_v10 = vrot.slane %v2174_v43, %v5342_v58 }
 0x52b   : > { %v2515_v44 = vcombine.low %v2507_v13, %v2514_v34  ;;  %v1985_v27 = vpop.permute.xlu0 %1984  ;;  %v2261_v11 = vrot.slane %v2047_v0, %v5342_v58  ;;  %v2516_v12 = vcombine.low %v2147_v23, %v2155_v59  ;;  %v2243_v52 = vrot.slane %v2221_v60, %v5342_v58  ;;  %v2019_v54 = vpop.permute.xlu1 %2018 }
 0x52c   : > { %v2033_v63 = vsel %vm1191_vm11, %v5280_v40, %v1985_v27  ;;  %v2519_v17 = vcombine.low %v2181_v9, %v2195_v30  ;;  %v2251_v21 = vcombine.high %v2229_v36, %v2229_v36  ;;  %v2220_v26 = vrot.slane %v2206_v7, %v5342_v58 }
 0x52d   : > { %4290 = vmatmul.mubr.msk.bf16.vlgmr.msra.gmra.mrb[16].mxu1 %vm1299_vm13, %v2515_v44  ;;  %v2049_v29 = vsel %vm1216_vm12, %v2033_v63, %v2017_v19  ;;  %v2518_v28 = vcombine.low %v2154_v1, %v2156_v3  ;;  %v2533_v18 = vrot.slane %v2517_v8, %v5342_v58  ;;  %v2204_v35 = vcombine.high %v2188_v2, %v2188_v2 }
 0x52e   : > { %4293 = vmatprep.mubr.msk.bf16.mxu1 %vm4440_vm14, %v4439_v56  ;;  %v2566_v25 = vcombine.low %v2188_v2, %v2202_v10  ;;  %v2254_v40 = vcombine.high %v2047_v0, %v2047_v0  ;;  %v2269_v6 = vcombine.high %v2261_v11, %v2261_v11  ;;  %v2526_v31 = vrot.slane %v2516_v12, %v5342_v58 }
 0x52f   : > { %v1987_v4 = vpop.permute.xlu0 %1986  ;;  %v2547_v5 = vrot.slane %v2519_v17, %v5342_v58  ;;  %v2568_v32 = vcombine.low %v2243_v52, %v2251_v21  ;;  %v2309_v13 = vrot.slane %v2049_v29, %v5342_v58  ;;  %v2222_v34 = vcombine.high %v2220_v26, %v2220_v26 }
 0x530   : > { %v2236_v37 = vrot.slane %v2220_v26, %v5342_v58  ;;  %v2567_v39 = vcombine.low %v2204_v35, %v2229_v36  ;;  %v2035_v42 = vsel %vm1191_vm11, %v5315_v41, %v1987_v4  ;;  %v2540_v44 = vrot.slane %v2518_v28, %v5342_v58 }
 0x531   : > { %v2548_v46 = vcombine.low %v2526_v31, %v2533_v18  ;;  %v4080_v48 = vcombine.high %v2181_v9, %v2195_v30  ;;  %v2582_v50 = vrot.slane %v2566_v25, %v5342_v58  ;;  %v2268_v51 = vrot.slane %v2254_v40, %v5342_v58 }
 0x532   : > { %v2291_v62 = vrot.slane %v2269_v6, %v5342_v58  ;;  %v2596_v14 = vrot.slane %v2568_v32, %v5342_v58  ;;  %v2277_v53 = vrot.slane %v2261_v11, %v5342_v58  ;;  %v2317_v23 = vcombine.high %v2309_v13, %v2309_v13 }
 0x533   : > { %v2549_v55 = vcombine.low %v2540_v44, %v2547_v5  ;;  %v2250_v45 = vrot.slane %v2222_v34, %v5342_v58  ;;  %v2252_v41 = vcombine.high %v2236_v37, %v2236_v37  ;;  %v2253_v22 = vcombine.high %v2243_v52, %v2243_v52  ;;  %v1989_v61 = vpop.permute.xlu0 %1988  ;;  %v2021_v52 = vpop.permute.xlu1 %2020 }
 0x534   : > { %v2051_v49 = vsel %vm1216_vm12, %v2035_v42, %v2019_v54  ;;  %v2589_v38 = vrot.slane %v2567_v39, %v5342_v58  ;;  %v2302_v57 = vcombine.high %v2049_v29, %v2049_v29  ;;  %v2556_v47 = vrot.slane %v2548_v46, %v5342_v58 }
 0x535   : > { %v2563_v59 = vrot.slane %v2549_v55, %v5342_v58  ;;  %v2575_v43 = vrot.slane %v4080_v48, %v5342_v58  ;;  %v2616_v27 = vcombine.low %v2277_v53, %v2291_v62  ;;  %v4081_v30 = vcombine.high %v2277_v53, %v2291_v62 }
 0x536   : > { %v2339_v60 = vrot.slane %v2317_v23, %v5342_v58  ;;  %v2350_v36 = vcombine.high %v2051_v49, %v2051_v49  ;;  %v2598_v1 = vcombine.low %v2589_v38, %v2596_v14  ;;  %v2614_v3 = vcombine.low %v2253_v22, %v2236_v37 }
 0x537   : > { %v2564_v0 = vcombine.low %v2556_v47, %v2563_v59  ;;  %v2270_v7 = vcombine.high %v2268_v51, %v2268_v51  ;;  %v2284_v8 = vrot.slane %v2268_v51, %v5342_v58  ;;  %v2037_v9 = vsel %vm1191_vm11, %v5313_v33, %v1989_v61 }
 0x538   : > { %v2615_v2 = vcombine.low %v2250_v45, %v2252_v41  ;;  %v2316_v63 = vrot.slane %v2302_v57, %v5342_v58  ;;  %v2325_v10 = vrot.slane %v2309_v13, %v5342_v58  ;;  %v2597_v11 = vcombine.low %v2575_v43, %v2582_v50 }
 0x539   : > { %4294 = vmatmul.mubr.msk.bf16.gmra.mrb[20].mxu1 %vm1299_vm13, %v2564_v0  ;;  %v2638_v12 = vrot.slane %v2616_v27, %v5342_v58  ;;  %v2645_v17 = vrot.slane %v4081_v30, %v5342_v58  ;;  %v2349_v21 = vcombine.high %v2339_v60, %v2339_v60  ;;  %v2364_v19 = vrot.slane %v2350_v36, %v5342_v58 }
 0x53a   : > { %4297 = vmatprep.mubr.msk.bf16.mxu1 %vm4440_vm14, %v4439_v56  ;;  %v2053_v33 = vsel %vm1216_vm12, %v2037_v9, %v2021_v52  ;;  %v2612_v26 = vrot.slane %v2598_v1, %v5342_v58  ;;  %v2624_v29 = vrot.slane %v2614_v3, %v5342_v58  ;;  %v2298_v28 = vrot.slane %v2270_v7, %v5342_v58 }
 0x53b   : > { %v2300_v18 = vcombine.high %v2284_v8, %v2284_v8  ;;  %v2357_v35 = vrot.slane %v2051_v49, %v5342_v58  ;;  %v2332_v25 = vrot.slane %v2316_v63, %v5342_v58  ;;  %v2347_v40 = vcombine.high %v2325_v10, %v2325_v10 }
 0x53c   : > { %v2605_v6 = vrot.slane %v2597_v11, %v5342_v58  ;;  %v2631_v4 = vrot.slane %v2615_v2, %v5342_v58  ;;  %v2398_v31 = vcombine.high %v2053_v33, %v2053_v33  ;;  %v2405_v5 = vrot.slane %v2053_v33, %v5342_v58 }
 0x53d   : > { %v2666_v32 = vcombine.low %v2349_v21, %v2332_v25  ;;  %v2366_v13 = vcombine.high %v2364_v19, %v2364_v19  ;;  %v2647_v37 = vcombine.low %v2638_v12, %v2645_v17  ;;  %v2663_v39 = vcombine.low %v2284_v8, %v2298_v28 }
 0x53e   : > { %v2613_v34 = vcombine.low %v2605_v6, %v2612_v26  ;;  %v2664_v42 = vcombine.low %v2300_v18, %v2325_v10  ;;  %v2665_v44 = vcombine.low %v2339_v60, %v2347_v40  ;;  %v2365_v46 = vcombine.high %v2357_v35, %v2357_v35 }
 0x53f   : > { %v2646_v48 = vcombine.low %v2624_v29, %v2631_v4  ;;  %v2318_v50 = vcombine.high %v2316_v63, %v2316_v63  ;;  %v2412_v51 = vrot.slane %v2398_v31, %v5342_v58  ;;  %v2694_v62 = vrot.slane %v2666_v32, %v5342_v58 }
 0x540   : > { %v2394_v14 = vrot.slane %v2366_v13, %v5342_v58  ;;  %v2413_v53 = vcombine.high %v2405_v5, %v2405_v5  ;;  %v2661_v54 = vrot.slane %v2647_v37, %v5342_v58  ;;  %v2673_v23 = vrot.slane %v2663_v39, %v5342_v58 }
 0x541   : > { %4298 = vmatmul.mubr.msk.bf16.gmra.mrb[24].mxu1 %vm1299_vm13, %v2613_v34  ;;  %v2373_v55 = vrot.slane %v2357_v35, %v5342_v58  ;;  %v2380_v45 = vrot.slane %v2364_v19, %v5342_v58  ;;  %v2680_v41 = vrot.slane %v2664_v42, %v5342_v58  ;;  %v2687_v22 = vrot.slane %v2665_v44, %v5342_v58 }
 0x542   : > { %4301 = vmatprep.mubr.msk.bf16.mxu1 %vm4440_vm14, %v4439_v56  ;;  %v2387_v49 = vrot.slane %v2365_v46, %v5342_v58  ;;  %v2654_v38 = vrot.slane %v2646_v48, %v5342_v58  ;;  %v2346_v57 = vrot.slane %v2318_v50, %v5342_v58  ;;  %v2348_v61 = vcombine.high %v2332_v25, %v2332_v25  ;;  %v4415_v46 = vld [vmem:[%s5708_s8] sm:$0xff]   ;;  %v4416_v48 = vld [vmem:[%s5708_s8 + $0x8] sm:$0xff]   ;;  %v4417_v50 = vld [vmem:[%s5708_s8 + $0x10] ss:$0 sps:$4 sm:$0x77]  }
 0x543   : > { %v2414_v47 = vcombine.high %v2412_v51, %v2412_v51  ;;  %v2428_v59 = vrot.slane %v2412_v51, %v5342_v58  ;;  %v2715_v43 = vcombine.low %v2380_v45, %v2394_v14  ;;  %v2435_v27 = vrot.slane %v2413_v53, %v5342_v58  ;;  %4318 = vmatpush3.bf16.msra.mxu0 %v4415_v46  ;;  %v4078_v53 = vld [vmem:[%s5707_s7 + $0xc] sm:$0x7] }
 0x544   : > { %v2662_v30 = vcombine.low %v2654_v38, %v2661_v54  ;;  %v2696_v60 = vcombine.low %v2687_v22, %v2694_v62  ;;  %v2713_v36 = vcombine.low %v2373_v55, %v2387_v49  ;;  %v4082_v0 = vcombine.high %v2373_v55, %v2387_v49  ;;  %4319 = vmatprep.subr.bf16.mxu0 %v4439_v56 }
 0x545   : > { %v2421_v1 = vrot.slane %v2405_v5, %v5342_v58  ;;  %v2695_v3 = vcombine.low %v2673_v23, %v2680_v41  ;;  %v2442_v7 = vrot.slane %v2414_v47, %v5342_v58  ;;  %v2444_v8 = vcombine.high %v2428_v59, %v2428_v59 }
 0x546   : > { %v2712_v9 = vcombine.low %v2346_v57, %v2348_v61  ;;  %v2743_v2 = vrot.slane %v2715_v43, %v5342_v58  ;;  %v2445_v63 = vcombine.high %v2435_v27, %v2435_v27  ;;  %v2710_v10 = vrot.slane %v2696_v60, %v5342_v58 }
 0x547   : > { %v2729_v11 = vrot.slane %v2713_v36, %v5342_v58  ;;  %v2736_v12 = vrot.slane %v4082_v0, %v5342_v58  ;;  %v2443_v17 = vcombine.high %v2421_v1, %v2421_v1  ;;  %v2703_v52 = vrot.slane %v2695_v3, %v5342_v58  ;;  %4320 = vmatpush3.bf16.msra.mxu0 %v4416_v48 }
 0x548   : > { %v2396_v21 = vcombine.high %v2380_v45, %v2380_v45  ;;  %v2764_v19 = vcombine.low %v2442_v7, %v2444_v8  ;;  %v2763_v33 = vcombine.low %v2445_v63, %v2428_v59  ;;  %v2722_v29 = vrot.slane %v2712_v9, %v5342_v58  ;;  %4321 = vmatprep.subr.bf16.mxu0 %v4439_v56 }
 0x549   : > { %4302 = vmatmul.mubr.msk.bf16.gmra.mrb[28].mxu1 %vm1299_vm13, %v2662_v30  ;;  %v2711_v26 = vcombine.low %v2703_v52, %v2710_v10  ;;  %v2745_v28 = vcombine.low %v2736_v12, %v2743_v2  ;;  %v2762_v18 = vcombine.low %v2435_v27, %v2443_v17  ;;  %v4443_v51 = vmov 65535  }
 0x54a   : > { %4305 = vmatprep.mubr.msk.bf16.mxu1 %vm4440_vm14, %v4439_v56  ;;  %v2744_v35 = vcombine.low %v2722_v29, %v2729_v11  ;;  %v2761_v25 = vcombine.low %v2396_v21, %v2421_v1  ;;  %v2785_v40 = vrot.slane %v2763_v33, %v5342_v58  ;;  %v2792_v4 = vrot.slane %v2764_v19, %v5342_v58 }
 0x54b   : > { %v2759_v6 = vrot.slane %v2745_v28, %v5342_v58  ;;  %v2778_v31 = vrot.slane %v2762_v18, %v5342_v58  ;;  %v4444_v54 = vmov 1983009808   ;;  %v5493_v55 = vrot.slane %v4078_v53, %v4734_v16 }
 0x54c   : > { %v2752_v5 = vrot.slane %v2744_v35, %v5342_v58  ;;  %v2771_v32 = vrot.slane %v2761_v25, %v5342_v58  ;;  %v2794_v34 = vcombine.low %v2785_v40, %v2792_v4  ;;  %v3034_v23 = vunpack.c.l.s4 %v4444_v54 }
 0x54d   : > { %v5497_v49 = vrot.slane %v4078_v53, %v4743_v20  ;;  %v5500_v47 = vrot.slane %v4078_v53, %v4750_v24  ;;  %vm3788_vm11 = vcmask 523264   ;;  %vm3926_vm12 = vcmask 23552  }
 0x54e   : > { %v2760_v13 = vcombine.low %v2752_v5, %v2759_v6  ;;  %v2793_v37 = vcombine.low %v2771_v32, %v2778_v31  ;;  %v2808_v39 = vrot.slane %v2794_v34, %v5342_v58  ;;  %v3035_v41 = vunpack.c.0.s8 %v3034_v23 }
 0x550   : > { %v2801_v42 = vrot.slane %v2793_v37, %v5342_v58  ;;  %v3693_v58 = vsel %vm3691_vm15, 4294967295, %v4443_v51  ;;  %v5504_v27 = vsub.s32 %v3035_v41, %v4731_v15 }
 0x551   : > { %4306 = vmatmul.mubr.msk.bf16.gmra.mrb[32].mxu1 %vm1299_vm13, %v2711_v26  ;;  %v3694_v62 = vsel %vm3692_vm0, %v3693_v58, 0 }
 0x552   : > { %4309 = vmatprep.mubr.msk.bf16.mxu1 %vm4440_vm14, %v4439_v56  ;;  %v2809_v44 = vcombine.low %v2801_v42, %v2808_v39  ;;  %v3696_v14 = vand.u32 %v4417_v50, %v3694_v62 }
 0x554   : > { %4322 = vmatpush3.bf16.msra.mxu0 %v3696_v14 }
 0x555   : > { %4327 = vmatprep.subr.bf16.mxu0 %v4439_v56 }
 0x559   : > { %4310 = vmatmul.mubr.msk.bf16.gmra.mrb[36].mxu1 %vm1299_vm13, %v2760_v13 }
 0x55a   : > { %4313 = vmatprep.mubr.msk.bf16.mxu1 %vm4440_vm14, %v4439_v56 }
 0x561   : > { %4314 = vmatmul.mubr.msk.bf16.gmra.mrb[40].mxu1 %vm1299_vm13, %v2809_v44 }
 0x600   : > { %v2913_v45 = vpop.f32.mrb[16].mxu1 }
 0x601   : > { %v2914_v22 = vadd.f32 %v2913_v45, %v5493_v55  ;;  %v4291_v38 = vpop.f32.mrb[17].mxu1 }
 0x602   : > { %v2916_v57 = vpop.f32.mrb[18].mxu1 }
 0x603   : > { %v2968_v61 = vmax.f32 %v2914_v22, 0.0  ;;  %v2917_v59 = vadd.f32 %v2916_v57, %v5493_v55  ;;  %v4292_v43 = vpop.f32.mrb[19].mxu1 }
 0x605   : > { %v2986_v30 = vmul.f32 %v5497_v49, %v2968_v61  ;;  %v2969_v60 = vmax.f32 %v2917_v59, 0.0 }
 0x607   : > { %v3004_v36 = vadd.f32 %v5500_v47, %v2986_v30  ;;  %v2987_v0 = vmul.f32 %v5497_v49, %v2969_v60 }
 0x609   : > { %v3032_v1 = vcombine.high %v3004_v36, %v3004_v36  ;;  %v3039_v3 = vrot.slane %v3004_v36, %v5504_v27  ;;  %v3005_v7 = vadd.f32 %v5500_v47, %v2987_v0 }
 0x60b   : > { %v3046_v8 = vrot.slane %v3032_v1, %v5504_v27  ;;  %v3047_v9 = vcombine.high %v3039_v3, %v3039_v3  ;;  %v3049_v2 = vcombine.high %v3005_v7, %v3005_v7  ;;  %v3056_v63 = vrot.slane %v3005_v7, %v5504_v27 }
 0x60c   : > { %v2921_v4 = vpop.f32.mrb[20].mxu1 }
 0x60d   : > { %v3048_v15 = vcombine.high %v3046_v8, %v3046_v8  ;;  %v3270_v10 = vcombine.low %v3039_v3, %v3047_v9  ;;  %v3063_v11 = vrot.slane %v3049_v2, %v5504_v27  ;;  %v3064_v12 = vcombine.high %v3056_v63, %v3056_v63  ;;  %v4295_v5 = vpop.f32.mrb[21].mxu1 }
 0x60e   : > { %v2922_v31 = vadd.f32 %v2921_v4, %v5493_v55  ;;  %v2924_v13 = vpop.f32.mrb[22].mxu1 }
 0x60f   : > { %v3271_v17 = vcombine.low %v3046_v8, %v3048_v15  ;;  %v3287_v52 = vcombine.low %v3056_v63, %v3064_v12  ;;  %v3278_v21 = vrot.slane %v3270_v10, %v5504_v27  ;;  %v3301_v26 = vrot.slane %v3063_v11, %v5504_v27  ;;  %v4296_v39 = vpop.f32.mrb[23].mxu1 }
 0x610   : > { %v2970_v34 = vmax.f32 %v2922_v31, 0.0  ;;  %v2925_v37 = vadd.f32 %v2924_v13, %v5493_v55  ;;  %v3065_v51 = vcombine.high %v3063_v11, %v3063_v11 }
 0x611   : > { %v3285_v19 = vrot.slane %v3271_v17, %v5504_v27  ;;  %v3294_v33 = vrot.slane %v3287_v52, %v5504_v27 }
 0x612   : > { %v2988_v42 = vmul.f32 %v5497_v49, %v2970_v34  ;;  %v2971_v44 = vmax.f32 %v2925_v37, 0.0 }
 0x613   : > { %v3286_v29 = vcombine.low %v3278_v21, %v3285_v19  ;;  %v3302_v28 = vcombine.low %v3294_v33, %v3301_v26 }
 0x614   : > { %v3006_v48 = vadd.f32 %v5500_v47, %v2988_v42  ;;  %v2989_v50 = vmul.f32 %v5497_v49, %v2971_v44  ;;  %v2929_v58 = vpop.f32.mrb[24].mxu1 }
 0x615   : > { %v3551_v18 = vsel %vm3550_vm1, %v3286_v29, 0.0  ;;  %v3553_v35 = vsel %vm3552_vm2, %v3302_v28, 0.0  ;;  %v2930_v54 = vadd.f32 %v2929_v58, %v5493_v55  ;;  %v4299_v23 = vpop.f32.mrb[25].mxu1 }
 0x616   : > { %v3554_v25 = vadd.f32 %v3553_v35, %v3551_v18  ;;  %v3066_v62 = vcombine.high %v3006_v48, %v3006_v48  ;;  %v3073_v14 = vrot.slane %v3006_v48, %v5504_v27  ;;  %v3007_v53 = vadd.f32 %v5500_v47, %v2989_v50  ;;  %v2932_v41 = vpop.f32.mrb[26].mxu1 }
 0x617   : > { %v4300_v59 = vpop.f32.mrb[27].mxu1  ;;  %v2972_v30 = vmax.f32 %v2930_v54, 0.0  ;;  %v2933_v60 = vadd.f32 %v2932_v41, %v5493_v55 }
 0x618   : > { %v3555_v40 = vrot.slane %v3554_v25, 4  ;;  %v3080_v22 = vrot.slane %v3066_v62, %v5504_v27  ;;  %v3081_v38 = vcombine.high %v3073_v14, %v3073_v14  ;;  %v3303_v57 = vcombine.low %v3065_v51, %v3073_v14 }
 0x619   : > { %v3083_v61 = vcombine.high %v3007_v53, %v3007_v53  ;;  %v3090_v43 = vrot.slane %v3007_v53, %v5504_v27  ;;  %v2990_v8 = vmul.f32 %v5497_v49, %v2972_v30  ;;  %v2973_v9 = vmax.f32 %v2933_v60, 0.0 }
 0x61a   : > { %v3556_v6 = vadd.f32 %v3555_v40, %v3554_v25  ;;  %v3304_v36 = vcombine.low %v3081_v38, %v3080_v22  ;;  %v3082_v0 = vcombine.high %v3080_v22, %v3080_v22  ;;  %v3311_v2 = vrot.slane %v3303_v57, %v5504_v27 }
 0x61b   : > { %v3097_v1 = vrot.slane %v3083_v61, %v5504_v27  ;;  %v3098_v7 = vcombine.high %v3090_v43, %v3090_v43  ;;  %v3008_v12 = vadd.f32 %v5500_v47, %v2990_v8  ;;  %v2991_v17 = vmul.f32 %v5497_v49, %v2973_v9 }
 0x61c   : > { %v3557_v32 = vrot.slane %v3556_v6, 2  ;;  %v3318_v63 = vrot.slane %v3304_v36, %v5504_v27  ;;  %v3320_v10 = vcombine.low %v3082_v0, %v3090_v43  ;;  %v2937_v52 = vpop.f32.mrb[28].mxu1 }
 0x61d   : > { %v3099_v15 = vcombine.high %v3097_v1, %v3097_v1  ;;  %v3334_v11 = vrot.slane %v3098_v7, %v5504_v27  ;;  %v2938_v26 = vadd.f32 %v2937_v52, %v5493_v55  ;;  %v4303_v29 = vpop.f32.mrb[29].mxu1  ;;  %v3100_v28 = vcombine.high %v3008_v12, %v3008_v12 }
 0x61e   : > { %v3558_v46 = vadd.f32 %v3557_v32, %v3556_v6  ;;  %v3319_v21 = vcombine.low %v3311_v2, %v3318_v63  ;;  %v3327_v19 = vrot.slane %v3320_v10, %v5504_v27  ;;  %v3107_v18 = vrot.slane %v3008_v12, %v5504_v27  ;;  %v2940_v25 = vpop.f32.mrb[30].mxu1 }
 0x61f   : > { %v3336_v33 = vcombine.low %v3097_v1, %v3099_v15  ;;  %v3009_v35 = vadd.f32 %v5500_v47, %v2991_v17  ;;  %v2974_v4 = vmax.f32 %v2938_v26, 0.0  ;;  %v4304_v31 = vpop.f32.mrb[31].mxu1  ;;  %v3114_v32 = vrot.slane %v3100_v28, %v5504_v27 }
 0x620   : > { %v3559_v45 = vrot.slane %v3558_v46, 1  ;;  %v3561_v40 = vsel %vm3550_vm1, %v3319_v21, 0.0  ;;  %v3335_v6 = vcombine.low %v3327_v19, %v3334_v11  ;;  %v3115_v13 = vcombine.high %v3107_v18, %v3107_v18 }
 0x621   : > { %v3117_v34 = vcombine.high %v3009_v35, %v3009_v35  ;;  %v3124_v37 = vrot.slane %v3009_v35, %v5504_v27  ;;  %v3344_v39 = vrot.slane %v3336_v33, %v5504_v27  ;;  %v2992_v44 = vmul.f32 %v5497_v49, %v2974_v4 }
 0x622   : > { %v3560_v3 = vadd.f32 %v3559_v45, %v3558_v46  ;;  %v3562_v42 = vsel %vm3552_vm2, %v3335_v6, 0.0  ;;  %v2941_v46 = vadd.f32 %v2940_v25, %v5493_v55  ;;  %v3116_v50 = vcombine.high %v3114_v32, %v3114_v32 }
 0x623   : > { %v3563_v48 = vadd.f32 %v3562_v42, %v3561_v40  ;;  %v3337_v51 = vcombine.low %v3107_v18, %v3115_v13  ;;  %v3131_v58 = vrot.slane %v3117_v34, %v5504_v27  ;;  %v3132_v62 = vcombine.high %v3124_v37, %v3124_v37 }
 0x624   : > { %v5543_v5 = vmul.f32 0.071428575, %v3560_v3  ;;  %v3367_v14 = vrot.slane %v3124_v37, %v5504_v27  ;;  %v3010_v53 = vadd.f32 %v5500_v47, %v2992_v44  ;;  %v2975_v54 = vmax.f32 %v2941_v46, 0.0  ;;  %v2945_v38 = vpop.f32.mrb[32].mxu1 }
 0x625   : > { %v3564_v23 = vrot.slane %v3563_v48, 4  ;;  %v3351_v45 = vrot.slane %v3337_v51, %v5504_v27  ;;  %v3353_v41 = vcombine.low %v3114_v32, %v3116_v50  ;;  %v3133_v22 = vcombine.high %v3131_v58, %v3131_v58  ;;  %v4307_v30 = vpop.f32.mrb[33].mxu1 }
 0x626   : > { %v3369_v57 = vcombine.low %v3132_v62, %v3131_v58  ;;  %v3134_v61 = vcombine.high %v3010_v53, %v3010_v53  ;;  %v3141_v59 = vrot.slane %v3010_v53, %v5504_v27  ;;  %v2993_v43 = vmul.f32 %v5497_v49, %v2975_v54  ;;  %v2948_v3 = vpop.f32.mrb[34].mxu1 }
 0x627   : > { %v3565_v60 = vadd.f32 %v3564_v23, %v3563_v48  ;;  %v3352_v36 = vcombine.low %v3344_v39, %v3351_v45  ;;  %v3360_v0 = vrot.slane %v3353_v41, %v5504_v27  ;;  %v2946_v1 = vadd.f32 %v2945_v38, %v5493_v55  ;;  %v4308_v63 = vpop.f32.mrb[35].mxu1 }
 0x628   : > { %v3377_v7 = vrot.slane %v3369_v57, %v5504_v27  ;;  %v3148_v8 = vrot.slane %v3134_v61, %v5504_v27  ;;  %v3149_v9 = vcombine.high %v3141_v59, %v3141_v59  ;;  %v3370_v2 = vcombine.low %v3133_v22, %v3141_v59 }
 0x629   : > { %v3566_v15 = vrot.slane %v3565_v60, 2  ;;  %v3368_v10 = vcombine.low %v3360_v0, %v3367_v14  ;;  %v3570_v11 = vsel %vm3550_vm1, %v3352_v36, 0.0  ;;  %v3011_v12 = vadd.f32 %v5500_v47, %v2993_v43 }
 0x62a   : > { %v3150_v17 = vcombine.high %v3148_v8, %v3148_v8  ;;  %v3384_v52 = vrot.slane %v3370_v2, %v5504_v27  ;;  %v3386_v21 = vcombine.low %v3149_v9, %v3148_v8  ;;  %v2976_v19 = vmax.f32 %v2946_v1, 0.0 }
 0x62b   : > { %v3567_v33 = vadd.f32 %v3566_v15, %v3565_v60  ;;  %v3571_v26 = vsel %vm3552_vm2, %v3368_v10, 0.0  ;;  %v3151_v29 = vcombine.high %v3011_v12, %v3011_v12  ;;  %v3158_v28 = vrot.slane %v3011_v12, %v5504_v27 }
 0x62c   : > { %v3572_v18 = vadd.f32 %v3571_v26, %v3570_v11  ;;  %v3385_v35 = vcombine.low %v3377_v7, %v3384_v52  ;;  %v3393_v25 = vrot.slane %v3386_v21, %v5504_v27  ;;  %v3400_v40 = vrot.slane %v3150_v17, %v5504_v27  ;;  %v2953_v13 = vpop.f32.mrb[36].mxu1 }
 0x62d   : > { %v3568_v6 = vrot.slane %v3567_v33, 1  ;;  %v3165_v4 = vrot.slane %v3151_v29, %v5504_v27  ;;  %v3166_v31 = vcombine.high %v3158_v28, %v3158_v28  ;;  %v2994_v32 = vmul.f32 %v5497_v49, %v2976_v19  ;;  %v4311_v44 = vpop.f32.mrb[37].mxu1 }
 0x62e   : > { %v3573_v34 = vrot.slane %v3572_v18, 4  ;;  %v3401_v37 = vcombine.low %v3393_v25, %v3400_v40  ;;  %v3579_v39 = vsel %vm3550_vm1, %v3385_v35, 0.0  ;;  %v2949_v42 = vadd.f32 %v2948_v3, %v5493_v55  ;;  %v2956_v58 = vpop.f32.mrb[38].mxu1 }
 0x62f   : > { %v5572_v46 = vadd.f32 %v3568_v6, %v3567_v33  ;;  %v3167_v48 = vcombine.high %v3165_v4, %v3165_v4  ;;  %v3402_v50 = vcombine.low %v3158_v28, %v3166_v31  ;;  %v3012_v51 = vadd.f32 %v5500_v47, %v2994_v32  ;;  %v4312_v23 = vpop.f32.mrb[39].mxu1 }
 0x630   : > { %v3574_v62 = vadd.f32 %v3573_v34, %v3572_v18  ;;  %v3580_v14 = vsel %vm3552_vm2, %v3401_v37, 0.0  ;;  %v2977_v53 = vmax.f32 %v2949_v42, 0.0  ;;  %v2954_v54 = vadd.f32 %v2953_v13, %v5493_v55 }
 0x631   : > { %v3581_v45 = vadd.f32 %v3580_v14, %v3579_v39  ;;  %v3403_v41 = vcombine.low %v3165_v4, %v3167_v48  ;;  %v3410_v22 = vrot.slane %v3402_v50, %v5504_v27  ;;  %v3168_v38 = vcombine.high %v3012_v51, %v3012_v51 }
 0x632   : > { %v3575_v57 = vrot.slane %v3574_v62, 2  ;;  %v3175_v61 = vrot.slane %v3012_v51, %v5504_v27  ;;  %v2995_v59 = vmul.f32 %v5497_v49, %v2977_v53  ;;  %v2978_v43 = vmax.f32 %v2954_v54, 0.0 }
 0x633   : > { %v3582_v30 = vrot.slane %v3581_v45, 4  ;;  %v3417_v60 = vrot.slane %v3403_v41, %v5504_v27  ;;  %v3182_v36 = vrot.slane %v3168_v38, %v5504_v27  ;;  %v2957_v0 = vadd.f32 %v2956_v58, %v5493_v55 }
 0x634   : > { %v3576_v1 = vadd.f32 %v3575_v57, %v3574_v62  ;;  %v3183_v3 = vcombine.high %v3175_v61, %v3175_v61  ;;  %v3013_v7 = vadd.f32 %v5500_v47, %v2995_v59  ;;  %v2996_v8 = vmul.f32 %v5497_v49, %v2978_v43  ;;  %v2961_v10 = vpop.f32.mrb[40].mxu1 }
 0x635   : > { %v5585_v9 = vadd.f32 %v3582_v30, %v3581_v45  ;;  %v3418_v2 = vcombine.low %v3410_v22, %v3417_v60  ;;  %v3433_v63 = vrot.slane %v3182_v36, %v5504_v27  ;;  %v3184_v15 = vcombine.high %v3182_v36, %v3182_v36  ;;  %v4315_v21 = vpop.f32.mrb[41].mxu1 }
 0x636   : > { %v3577_v11 = vrot.slane %v3576_v1, 1  ;;  %v3419_v12 = vcombine.low %v3175_v61, %v3183_v3  ;;  %v3185_v17 = vcombine.high %v3013_v7, %v3013_v7  ;;  %v3192_v52 = vrot.slane %v3013_v7, %v5504_v27  ;;  %v2964_v28 = vpop.f32.mrb[42].mxu1 }
 0x637   : > { %v3584_v19 = vrot.slane %v5585_v9, 2  ;;  %v3588_v33 = vsel %vm3550_vm1, %v3418_v2, 0.0  ;;  %v3014_v26 = vadd.f32 %v5500_v47, %v2996_v8  ;;  %v2979_v29 = vmax.f32 %v2957_v0, 0.0  ;;  %v4316_v6 = vpop.f32.mrb[43].mxu1 }
 0x638   : > { %v5592_v18 = vadd.f32 %v3577_v11, %v3576_v1  ;;  %v3426_v35 = vrot.slane %v3419_v12, %v5504_v27  ;;  %v3199_v25 = vrot.slane %v3185_v17, %v5504_v27  ;;  %v3200_v40 = vcombine.high %v3192_v52, %v3192_v52 }
 0x639   : > { %v3435_v4 = vcombine.low %v3184_v15, %v3192_v52  ;;  %v3202_v31 = vcombine.high %v3014_v26, %v3014_v26  ;;  %v3209_v32 = vrot.slane %v3014_v26, %v5504_v27  ;;  %v2997_v13 = vmul.f32 %v5497_v49, %v2979_v29 }
 0x63a   : > { %v3434_v34 = vcombine.low %v3426_v35, %v3433_v63  ;;  %v3436_v37 = vcombine.low %v3200_v40, %v3199_v25  ;;  %v3201_v39 = vcombine.high %v3199_v25, %v3199_v25  ;;  %v2962_v42 = vadd.f32 %v2961_v10, %v5493_v55 }
 0x63b   : > { %v3443_v44 = vrot.slane %v3435_v4, %v5504_v27  ;;  %v3216_v48 = vrot.slane %v3202_v31, %v5504_v27  ;;  %v3217_v50 = vcombine.high %v3209_v32, %v3209_v32  ;;  %v3015_v51 = vadd.f32 %v5500_v47, %v2997_v13 }
 0x63c   : > { %v3589_v58 = vsel %vm3552_vm2, %v3434_v34, 0.0  ;;  %v3450_v62 = vrot.slane %v3436_v37, %v5504_v27  ;;  %v3452_v14 = vcombine.low %v3201_v39, %v3209_v32  ;;  %v2980_v53 = vmax.f32 %v2962_v42, 0.0 }
 0x63d   : > { %v3590_v54 = vadd.f32 %v3589_v58, %v3588_v33  ;;  %v3218_v23 = vcombine.high %v3216_v48, %v3216_v48  ;;  %v3466_v45 = vrot.slane %v3217_v50, %v5504_v27  ;;  %v3219_v41 = vcombine.high %v3015_v51, %v3015_v51 }
 0x63e   : > { %v3451_v22 = vcombine.low %v3443_v44, %v3450_v62  ;;  %v3459_v38 = vrot.slane %v3452_v14, %v5504_v27  ;;  %v3226_v57 = vrot.slane %v3015_v51, %v5504_v27  ;;  %v2998_v61 = vmul.f32 %v5497_v49, %v2980_v53 }
 0x63f   : > { %v3591_v59 = vrot.slane %v3590_v54, 4  ;;  %v3468_v43 = vcombine.low %v3216_v48, %v3218_v23  ;;  %v3233_v30 = vrot.slane %v3219_v41, %v5504_v27  ;;  %v2965_v60 = vadd.f32 %v2964_v28, %v5493_v55 }
 0x640   : > { %v3597_v36 = vsel %vm3550_vm1, %v3451_v22, 0.0  ;;  %v3467_v0 = vcombine.low %v3459_v38, %v3466_v45  ;;  %v3234_v1 = vcombine.high %v3226_v57, %v3226_v57  ;;  %v3016_v3 = vadd.f32 %v5500_v47, %v2998_v61 }
 0x641   : > { %v3592_v7 = vadd.f32 %v3591_v59, %v3590_v54  ;;  %v3476_v8 = vrot.slane %v3468_v43, %v5504_v27  ;;  %v3235_v2 = vcombine.high %v3233_v30, %v3233_v30  ;;  %v2981_v63 = vmax.f32 %v2965_v60, 0.0 }
 0x642   : > { %v3598_v15 = vsel %vm3552_vm2, %v3467_v0, 0.0  ;;  %v3469_v10 = vcombine.low %v3226_v57, %v3234_v1  ;;  %v3236_v11 = vcombine.high %v3016_v3, %v3016_v3  ;;  %v3243_v12 = vrot.slane %v3016_v3, %v5504_v27 }
 0x643   : > { %v3599_v17 = vadd.f32 %v3598_v15, %v3597_v36  ;;  %v3485_v55 = vcombine.low %v3233_v30, %v3235_v2  ;;  %v2999_v52 = vmul.f32 %v5497_v49, %v2981_v63  ;;  %v3585_v21 = vadd.f32 %v3584_v19, %v5585_v9 }
 0x644   : > { %v3483_v33 = vrot.slane %v3469_v10, %v5504_v27  ;;  %v3250_v26 = vrot.slane %v3236_v11, %v5504_v27  ;;  %v3251_v29 = vcombine.high %v3243_v12, %v3243_v12  ;;  %v3499_v28 = vrot.slane %v3243_v12, %v5504_v27 }
 0x645   : > { %v3600_v35 = vrot.slane %v3599_v17, 4  ;;  %v3492_v25 = vrot.slane %v3485_v55, %v5504_v27  ;;  %v3017_v40 = vadd.f32 %v5500_v47, %v2999_v52  ;;  %v3586_v6 = vrot.slane %v3585_v21, 1 }
 0x646   : > { %v3484_v4 = vcombine.low %v3476_v8, %v3483_v33  ;;  %v3501_v49 = vcombine.low %v3251_v29, %v3250_v26  ;;  %v3252_v31 = vcombine.high %v3250_v26, %v3250_v26  ;;  %v3593_v9 = vrot.slane %v3592_v7, 2 }
 0x647   : > { %v3500_v19 = vcombine.low %v3492_v25, %v3499_v28  ;;  %v3253_v32 = vcombine.high %v3017_v40, %v3017_v40  ;;  %v3260_v13 = vrot.slane %v3017_v40, %v5504_v27  ;;  %v3587_v34 = vadd.f32 %v3586_v6, %v3585_v21  ;;  %v3658_v40 = vpop.permute.xlu0 %3657 }
 0x648   : > { %v3509_v37 = vrot.slane %v3501_v49, %v5504_v27  ;;  %v3606_v39 = vsel %vm3550_vm1, %v3484_v4, 0.0  ;;  %v3594_v42 = vadd.f32 %v3593_v9, %v3592_v7  ;;  %v3601_v44 = vadd.f32 %v3600_v35, %v3599_v17  ;;  %v4418_v49 = vld [vmem:[%s5709_s9] sm:$0xff]   ;;  %v4419_v9 = vld [vmem:[%s5709_s9 + $0x8] sm:$0xff]  }
 0x649   : > { %v3607_v48 = vsel %vm3552_vm2, %v3500_v19, 0.0  ;;  %v3267_v47 = vrot.slane %v3253_v32, %v5504_v27  ;;  %v3268_v50 = vcombine.high %v3260_v13, %v3260_v13  ;;  %v3502_v51 = vcombine.low %v3252_v31, %v3260_v13  ;;  %v4420_v19 = vld [vmem:[%s5709_s9 + $0x10] sm:$0xff]   ;;  %v4421_v32 = vld [vmem:[%s5709_s9 + $0x18] sm:$0xff]   ;;  %v3667_v13 = vld [vmem:[%s5711_s11] sm:$0x7] }
 0x64a   : > { %v3608_v58 = vadd.f32 %v3607_v48, %v3606_v39  ;;  %v3595_v62 = vrot.slane %v3594_v42, 1  ;;  %v3602_v14 = vrot.slane %v3601_v44, 2  ;;  %v3625_v53 = vmul.f32 0.071428575, %v5572_v46 }
 0x64b   : > { %v3269_v54 = vcombine.high %v3267_v47, %v3267_v47  ;;  %v3516_v23 = vrot.slane %v3502_v51, %v5504_v27  ;;  %v3518_v45 = vcombine.low %v3268_v50, %v3267_v47  ;;  %v3626_v41 = vmul.f32 0.071428575, %v5592_v18 }
 0x64c   : > { %v3609_v22 = vrot.slane %v3608_v58, 4  ;;  %v3596_v38 = vadd.f32 %v3595_v62, %v3594_v42  ;;  %v3603_v57 = vadd.f32 %v3602_v14, %v3601_v44  ;;  %v3627_v61 = vmul.f32 0.071428575, %v3587_v34  ;;  %v4422_v14 = vld [vmem:[%s5710_s10] sm:$0xff]  }
 0x64d   : > { %v3517_v59 = vcombine.low %v3509_v37, %v3516_v23  ;;  %v3525_v43 = vrot.slane %v3518_v45, %v5504_v27  ;;  %v3532_v30 = vrot.slane %v3269_v54, %v5504_v27  ;;  %v3642_v60 = vsel %vm3641_vm3, %v3625_v53, %v5543_v5  ;;  %v4423_v54 = vld [vmem:[%s5710_s10 + $0x8] sm:$0xff]   ;;  %v4424_v23 = vld [vmem:[%s5710_s10 + $0x10] sm:$0xff]   ;;  %v4425_v45 = vld [vmem:[%s5710_s10 + $0x18] sm:$0xff]  }
 0x64e   : > { %v3604_v36 = vrot.slane %v3603_v57, 1  ;;  %v3610_v46 = vadd.f32 %v3609_v22, %v3608_v58  ;;  %v3628_v0 = vmul.f32 0.071428575, %v3596_v38  ;;  %v3644_v1 = vsel %vm3643_vm4, %v3626_v41, %v3642_v60  ;;  %v4102_v41 = vld [vmem:[%s5711_s11 + $0x4] sm:$0x7] }
 0x64f   : > { %v3533_v3 = vcombine.low %v3525_v43, %v3532_v30  ;;  %v3615_v18 = vsel %vm3550_vm1, %v3517_v59, 0.0  ;;  %v3646_v7 = vsel %vm3645_vm5, %v3627_v61, %v3644_v1  ;;  %v3671_v34 = vrot.slane %v3667_v13, %v4734_v16  ;;  %v4108_v1 = vld [vmem:[%s5712_s12] ss:$0 sm:$0xff] }
 0x650   : > { %v3605_v8 = vadd.f32 %v3604_v36, %v3603_v57  ;;  %v3611_v2 = vrot.slane %v3610_v46, 2  ;;  %v3648_v63 = vsel %vm3647_vm6, %v3628_v0, %v3646_v7  ;;  %v3742_v42 = vrot.slane %v3667_v13, %v4743_v20 }
 0x651   : > { %v3616_v15 = vsel %vm3552_vm2, %v3533_v3, 0.0  ;;  %v3747_v50 = vrot.slane %v3667_v13, %v4750_v24  ;;  %v3763_v22 = vrot.slane %v4102_v41, %v4734_v16  ;;  %v3836_v61 = vrot.slane %v4102_v41, %v4743_v20 }
 0x652   : > { %v3612_v27 = vadd.f32 %v3611_v2, %v3610_v46  ;;  %v3617_v10 = vadd.f32 %v3616_v15, %v3615_v18  ;;  %v3629_v5 = vmul.f32 0.071428575, %v3605_v8  ;;  %v3841_v60 = vrot.slane %v4102_v41, %v4750_v24 }
 0x654   : > { %v3613_v11 = vrot.slane %v3612_v27, 1  ;;  %v3618_v12 = vrot.slane %v3617_v10, 4  ;;  %v3650_v17 = vsel %vm3649_vm7, %v3629_v5, %v3648_v63 }
 0x656   : > { %v3614_v55 = vadd.f32 %v3613_v11, %v3612_v27  ;;  %v3619_v52 = vadd.f32 %v3618_v12, %v3617_v10 }
 0x658   : > { %v3620_v21 = vrot.slane %v3619_v52, 2  ;;  %v3630_v33 = vmul.f32 0.071428575, %v3614_v55 }
 0x65a   : > { %v3621_v26 = vadd.f32 %v3620_v21, %v3619_v52  ;;  %v3652_v29 = vsel %vm3651_vm8, %v3630_v33, %v3650_v17 }
 0x65c   : > { %v3622_v28 = vrot.slane %v3621_v26, 1 }
 0x65e   : > { %v3623_v35 = vadd.f32 %v3622_v28, %v3621_v26 }
 0x660   : > { %v3631_v25 = vmul.f32 0.071428575, %v3623_v35 }
 0x662   : > { %v3654_v6 = vsel %vm3653_vm9, %v3631_v25, %v3652_v29 }
 0x663   : > { %v3660_v4 = vsel %vm3550_vm1, %v3654_v6, %v3658_v40 }
 0x664   : > { %v3661_v31 = vpack.c.bf16 %v3660_v4, %v3660_v4 }
 0x666   : > { %4324 = vmatmul.mubr.msk.bf16.vlgmr.msra.gmra.mrb[32].mxu0 %vm3687_vm10, %v3661_v31 }
 0x667   : > { %4328 = vmatpush3.bf16.msra.mxu0 %v4418_v49  ;;  %4335 = vmatprep.mubr.msk.bf16.mxu0 %vm4440_vm14, %v4439_v56 }
 0x668   : > { %4329 = vmatprep.subr.bf16.mxu0 %v4439_v56 }
 0x66b   : > { %4330 = vmatpush3.bf16.msra.mxu0 %v4419_v9 }
 0x66c   : > { %4331 = vmatprep.subr.bf16.mxu0 %v4439_v56 }
 0x66f   : > { %4332 = vmatpush3.bf16.msra.mxu0 %v4420_v19 }
 0x670   : > { %4333 = vmatprep.subr.bf16.mxu0 %v4439_v56 }
 0x673   : > { %4334 = vmatpush3.bf16.msra.mxu0 %v4421_v32 }
 0x674   : > { %4339 = vmatprep.subr.bf16.mxu0 %v4439_v56 }
 0x739   : > { %v3732_v37 = vpop.f32.mrb[32].mxu0 }
 0x73a   : > { %v3733_v39 = vadd.f32 %v3732_v37, %v3671_v34  ;;  %v4325_v44 = vpop.f32.mrb[33].mxu0 }
 0x73b   : > { %v3735_v48 = vpop.f32.mrb[34].mxu0 }
 0x73c   : > { %v3738_v47 = vmax.f32 %v3733_v39, 0.0  ;;  %v4326_v51 = vpop.f32.mrb[35].mxu0 }
 0x73e   : > { %v3743_v58 = vmul.f32 %v3742_v42, %v3738_v47 }
 0x740   : > { %v3748_v62 = vadd.f32 %v3747_v50, %v3743_v58 }
 0x742   : > { %v3749_v53 = vpack.c.bf16 %v3748_v62, %v3748_v62 }
 0x744   : > { %4336 = vmatmul.mubr.msk.bf16.vlgmr.msra.gmra.mrb[36].mxu0 %vm3788_vm11, %v3749_v53 }
 0x745   : > { %4340 = vmatpush3.bf16.msra.mxu0 %v4422_v14  ;;  %4347 = vmatprep.mubr.msk.bf16.mxu0 %vm4440_vm14, %v4439_v56 }
 0x746   : > { %4341 = vmatprep.subr.bf16.mxu0 %v4439_v56 }
 0x749   : > { %4342 = vmatpush3.bf16.msra.mxu0 %v4423_v54 }
 0x74a   : > { %4343 = vmatprep.subr.bf16.mxu0 %v4439_v56 }
 0x74d   : > { %4344 = vmatpush3.bf16.msra.mxu0 %v4424_v23 }
 0x74e   : > { %4345 = vmatprep.subr.bf16.mxu0 %v4439_v56 }
 0x751   : > { %4346 = vmatpush3.bf16.msra.mxu0 %v4425_v45 }
 0x817   : > { %v3826_v38 = vpop.f32.mrb[36].mxu0 }
 0x818   : > { %v3827_v57 = vadd.f32 %v3826_v38, %v3763_v22  ;;  %v4337_v59 = vpop.f32.mrb[37].mxu0 }
 0x819   : > { %v3829_v43 = vpop.f32.mrb[38].mxu0 }
 0x81a   : > { %v3832_v30 = vmax.f32 %v3827_v57, 0.0  ;;  %v4338_v36 = vpop.f32.mrb[39].mxu0 }
 0x81c   : > { %v3837_v46 = vmul.f32 %v3836_v61, %v3832_v30 }
 0x81e   : > { %v3842_v56 = vadd.f32 %v3841_v60, %v3837_v46 }
 0x820   : > { %v3843_v0 = vpack.c.bf16 %v3842_v56, %v3842_v56 }
 0x822   : > { %4348 = vmatmul.mubr.msk.bf16.vlgmr.msra.gmra.mrb[40].mxu0 %vm3788_vm11, %v3843_v0 }
 0x8f5   : > { %v3920_v16 = vpop.f32.mrb[40].mxu0 }
 0x8f6   : > { %v3921_v20 = vadd.f32 %v4108_v1, %v3920_v16  ;;  %v4349_v3 = vpop.f32.mrb[41].mxu0 }
 0x8f7   : > { %v3923_v24 = vpop.f32.mrb[42].mxu0 }
 0x8f8   : > { %3927 = vst.msk [vmem:[%s485_s19] sm:$0xff] %vm3926_vm12, %v3921_v20  ;;  %v4350_v18 = vpop.f32.mrb[43].mxu0 }
 0x8f9 PF: > { %s23_s25 = sadd.s32 1, %s4432_s25  }
 0x8fa   : > { %p20_p5 = scmp.ge.s32.totalorder %s23_s25, 4  }
 0x8fc   :  { %22 = sbr.rel (!%p20_p5) target bundleno = 1 (0x1), region = 112 }

</bundles_post_ra>
